<compile_context>
chip_gen: v5e
topology: v5e:2x2
jax: 0.10.0
libtpu: 0.0.40
codegen_flags: <defaults>
</compile_context>

<pallas_src>
import jax
import jax.numpy as jnp
from jax.experimental import pallas as pl
from jax.experimental.pallas import tpu as pltpu

# ----------------------------- config (small) -----------------------------
B = 2           # batch
S = 8           # sequence length
H = 32          # hidden size
NH = 4          # attention heads
HD = H // NH    # head dim
F = 64          # FFN intermediate size
LAYERS = 2      # encoder layers
VOCAB = 100     # vocab size
LN_EPS = 1e-12
BS = B * S      # flattened rows


# ----------------------------- in-kernel helpers (f32) -----------------------------
def _layernorm(x, gamma, beta, eps=LN_EPS):
    mu = jnp.mean(x, axis=-1, keepdims=True)
    var = jnp.mean((x - mu) ** 2, axis=-1, keepdims=True)
    return (x - mu) * jax.lax.rsqrt(var + eps) * gamma + beta


def _gelu(x):
    # TODO(synk): HF BERT default is the exact (erf) GELU; tanh approximation used here to
    #             avoid relying on an erf lowering inside Mosaic.
    c = 0.7978845608028654  # sqrt(2/pi)
    return 0.5 * x * (1.0 + jnp.tanh(c * (x + 0.044715 * x * x * x)))


# ----------------------------- single fused forward kernel -----------------------------
def _fused_forward_kernel(
    ids_ref, mask_ref,                                  # (BS,1) int32 ids, (1,BS) f32 key mask
    tok_emb_ref, pos_emb_ref,                           # (VOCAB,H), (BS,H) pre-tiled positions
    eg_ref, eb_ref,                                     # embedding LayerNorm
    wqkv_ref, bqkv_ref, wo_ref, bo_ref,                 # attention (stacked over layers)
    ln1g_ref, ln1b_ref,
    w1_ref, b1_ref, w2_ref, b2_ref,                     # FFN (stacked over layers)
    ln2g_ref, ln2b_ref,
    rw_ref, rb_ref,                                     # regressor
    o_ref,                                              # (B, 1) logits
):
    # ---- embedding lookup as an exact f32 one-hot matmul + position add (fused in-kernel) ----
    ids = ids_ref[...]                                                     # (BS, 1) int32
    onehot = (jax.lax.broadcasted_iota(jnp.int32, (BS, VOCAB), 1) == ids).astype(jnp.float32)
    x = jnp.dot(onehot, tok_emb_ref[...], preferred_element_type=jnp.float32)   # (BS, H)
    x = x + pos_emb_ref[...]
    h = _layernorm(x, eg_ref[...], eb_ref[...])                            # (BS, H) f32

    # ---- block-diagonal additive attention bias (cross-batch + padded keys), built in-kernel ----
    q_pos = jax.lax.broadcasted_iota(jnp.int32, (BS, BS), 0)
    k_pos = jax.lax.broadcasted_iota(jnp.int32, (BS, BS), 1)
    if S & (S - 1) == 0:                                                   # static: S is a power of 2
        _sh = S.bit_length() - 1
        q_batch, k_batch = q_pos >> _sh, k_pos >> _sh
    else:
        q_batch, k_batch = q_pos // S, k_pos // S
    same_batch = q_batch == k_batch
    key_valid = jnp.broadcast_to(mask_ref[...], (BS, BS)) > 0.5
    bias2d = jnp.where(jnp.logical_and(same_batch, key_valid), 0.0, -1e9).astype(jnp.float32)

    for li in range(LAYERS):                                               # static unroll, weights VMEM-resident
        # ---- fused QKV projection: one (BS,H)x(H,3H) MXU matmul, bf16 in / f32 acc ----
        # (1/sqrt(HD) scale is pre-folded into the Q columns of wqkv/bqkv at init.)
        qkv = jnp.dot(h.astype(jnp.bfloat16), wqkv_ref[li],
                      preferred_element_type=jnp.float32) + bqkv_ref[li]   # (BS, 3H)

        # ---- per-head attention over the full (BS, BS) score matrix; contexts kept as values ----
        ctxs = []
        for hh in range(NH):
            qh = qkv[:, hh * HD:(hh + 1) * HD].astype(jnp.bfloat16)
            kh = qkv[:, H + hh * HD:H + (hh + 1) * HD].astype(jnp.bfloat16)
            vh = qkv[:, 2 * H + hh * HD:2 * H + (hh + 1) * HD].astype(jnp.bfloat16)
            s = jnp.einsum('qd,kd->qk', qh, kh,
                           preferred_element_type=jnp.float32) + bias2d    # (BS, BS) f32
            s = s - jnp.max(s, axis=-1, keepdims=True)
            p = jnp.exp(s)
            p = p / jnp.sum(p, axis=-1, keepdims=True)                     # exact softmax
            ctxs.append(jnp.dot(p.astype(jnp.bfloat16), vh,
                                preferred_element_type=jnp.float32))       # (BS, HD)
        ctx = jnp.concatenate(ctxs, axis=-1)                               # (BS, H), no scratch

        attn_out = jnp.dot(ctx.astype(jnp.bfloat16), wo_ref[li],
                           preferred_element_type=jnp.float32) + bo_ref[li]
        h1 = _layernorm(h + attn_out, ln1g_ref[li], ln1b_ref[li])

        # ---- feed-forward ----
        ff = _gelu(jnp.dot(h1.astype(jnp.bfloat16), w1_ref[li],
                           preferred_element_type=jnp.float32) + b1_ref[li])
        ff = jnp.dot(ff.astype(jnp.bfloat16), w2_ref[li],
                     preferred_element_type=jnp.float32) + b2_ref[li]
        h = _layernorm(h1 + ff, ln2g_ref[li], ln2b_ref[li])

    # ---- vectorized CLS pooling + Linear(H, 1) regressor (dropout = eval-mode identity) ----
    cls = jnp.concatenate([h[b * S:b * S + 1, :] for b in range(B)], axis=0)   # (B, H)
    o_ref[...] = jnp.sum(cls * rw_ref[...], axis=-1, keepdims=True) + rb_ref[...]


def fused_forward(ids_col, mask_row, p):
    in_arrays = (
        ids_col, mask_row,
        p["tok_emb"], p["pos_emb_tiled"],
        p["emb_ln_g"], p["emb_ln_b"],
        p["wqkv"], p["bqkv"], p["wo"], p["bo"],
        p["ln1_g"], p["ln1_b"],
        p["w1"], p["b1"], p["w2"], p["b2"],
        p["ln2_g"], p["ln2_b"],
        p["reg_w"], p["reg_b"],
    )
    # Single un-gridded invocation; every operand is a whole-array VMEM resident (~70 KB total).
    return pl.pallas_call(
        _fused_forward_kernel,
        out_shape=jax.ShapeDtypeStruct((B, 1), jnp.float32),
        in_specs=[pl.BlockSpec(memory_space=pltpu.MemorySpace.VMEM) for _ in in_arrays],
        out_specs=pl.BlockSpec(memory_space=pltpu.MemorySpace.VMEM),
    )(*in_arrays)


# ----------------------------- parameter init (stacked per-layer) -----------------------------
def init_params(key):
    scale = 0.02

    def dense(k, shape, dtype=jnp.float32):
        return (scale * jax.random.normal(k, shape, dtype=jnp.float32)).astype(dtype)

    keys = jax.random.split(key, 3 + LAYERS)
    pos_emb = dense(keys[1], (S, H))
    params = {
        "tok_emb": dense(keys[0], (VOCAB, H)),
        "pos_emb_tiled": jnp.tile(pos_emb, (B, 1)),          # (BS, H) — folded once at init
        "emb_ln_g": jnp.ones((1, H), jnp.float32),
        "emb_ln_b": jnp.zeros((1, H), jnp.float32),
        "reg_w": dense(keys[2], (1, H)),                     # row vector (lane-dense)
        "reg_b": jnp.zeros((1, 1), jnp.float32),
    }

    attn_scale = 1.0 / (HD ** 0.5)
    wqkv, bqkv, wo, bo = [], [], [], []
    ln1g, ln1b, w1, b1, w2, b2, ln2g, ln2b = [], [], [], [], [], [], [], []
    for li in range(LAYERS):
        lk = jax.random.split(keys[3 + li], 6)
        wq = dense(lk[0], (H, H)) * attn_scale               # 1/sqrt(HD) folded into Q weights
        wk = dense(lk[1], (H, H))
        wv = dense(lk[2], (H, H))
        wqkv.append(jnp.concatenate([wq, wk, wv], axis=1).astype(jnp.bfloat16))  # (H, 3H)
        bq = jnp.zeros((1, H), jnp.float32) * attn_scale     # scale folded into Q bias too
        bqkv.append(jnp.concatenate([bq, jnp.zeros((1, 2 * H), jnp.float32)], axis=1))
        wo.append(dense(lk[3], (H, H), jnp.bfloat16))
        bo.append(jnp.zeros((1, H), jnp.float32))
        ln1g.append(jnp.ones((1, H), jnp.float32))
        ln1b.append(jnp.zeros((1, H), jnp.float32))
        w1.append(dense(lk[4], (H, F), jnp.bfloat16))
        b1.append(jnp.zeros((1, F), jnp.float32))
        w2.append(dense(lk[5], (F, H), jnp.bfloat16))
        b2.append(jnp.zeros((1, H), jnp.float32))
        ln2g.append(jnp.ones((1, H), jnp.float32))
        ln2b.append(jnp.zeros((1, H), jnp.float32))

    params.update({
        "wqkv": jnp.stack(wqkv), "bqkv": jnp.stack(bqkv),
        "wo": jnp.stack(wo), "bo": jnp.stack(bo),
        "ln1_g": jnp.stack(ln1g), "ln1_b": jnp.stack(ln1b),
        "w1": jnp.stack(w1), "b1": jnp.stack(b1),
        "w2": jnp.stack(w2), "b2": jnp.stack(b2),
        "ln2_g": jnp.stack(ln2g), "ln2_b": jnp.stack(ln2b),
    })
    return params


# ----------------------------- full forward -----------------------------
@jax.jit
def transformer_model_forward(params, input_ids, attention_mask):
    # Only trivial reshapes remain outside the kernel; embedding gather, position add and
    # the block-diagonal attention bias are all built inside the fused kernel.
    ids_col = input_ids.reshape(BS, 1).astype(jnp.int32)          # (BS, 1)
    mask_row = attention_mask.reshape(1, BS).astype(jnp.float32)  # (1, BS)
    return fused_forward(ids_col, mask_row, params)               # (B, 1) logits


if __name__ == "__main__":
    key = jax.random.PRNGKey(0)
    k_params, k_ids = jax.random.split(key)

    params = init_params(k_params)
    input_ids = jax.random.randint(k_ids, (B, S), 0, VOCAB, dtype=jnp.int32)
    attention_mask = jnp.array(
        [[1, 1, 1, 1, 1, 1, 0, 0],
         [1, 1, 1, 1, 1, 1, 1, 1]], dtype=jnp.float32)            # (B, S)

    logits = transformer_model_forward(params, input_ids, attention_mask)
    jax.block_until_ready(logits)
    assert logits.shape == (B, 1) and logits.dtype == jnp.float32
    print("KERNEL_OK")
</pallas_src>

<mosaic_0001>
module attributes {stable_mosaic.version = 11 : i64} {
  func.func @_fused_forward_kernel(%arg0: memref<16x1xi32, #tpu.memory_space<vmem>>, %arg1: memref<1x16xf32, #tpu.memory_space<vmem>>, %arg2: memref<100x32xf32, #tpu.memory_space<vmem>>, %arg3: memref<16x32xf32, #tpu.memory_space<vmem>>, %arg4: memref<1x32xf32, #tpu.memory_space<vmem>>, %arg5: memref<1x32xf32, #tpu.memory_space<vmem>>, %arg6: memref<2x32x96xbf16, #tpu.memory_space<vmem>>, %arg7: memref<2x1x96xf32, #tpu.memory_space<vmem>>, %arg8: memref<2x32x32xbf16, #tpu.memory_space<vmem>>, %arg9: memref<2x1x32xf32, #tpu.memory_space<vmem>>, %arg10: memref<2x1x32xf32, #tpu.memory_space<vmem>>, %arg11: memref<2x1x32xf32, #tpu.memory_space<vmem>>, %arg12: memref<2x32x64xbf16, #tpu.memory_space<vmem>>, %arg13: memref<2x1x64xf32, #tpu.memory_space<vmem>>, %arg14: memref<2x64x32xbf16, #tpu.memory_space<vmem>>, %arg15: memref<2x1x32xf32, #tpu.memory_space<vmem>>, %arg16: memref<2x1x32xf32, #tpu.memory_space<vmem>>, %arg17: memref<2x1x32xf32, #tpu.memory_space<vmem>>, %arg18: memref<1x32xf32, #tpu.memory_space<vmem>>, %arg19: memref<1x1xf32, #tpu.memory_space<vmem>>, %arg20: memref<2x1xf32, #tpu.memory_space<vmem>>) attributes {dimension_semantics = [], scalar_prefetch = 0 : i64, scratch_operands = 0 : i64, tpu.core_type = #tpu.core_type<tc>} {
    %c0 = arith.constant 0 : index
    %c0_0 = arith.constant 0 : index
    %0 = vector.load %arg0[%c0, %c0_0] : memref<16x1xi32, #tpu.memory_space<vmem>>, vector<16x1xi32>
    %1 = tpu.iota {dimensions = array<i32: 1>} : vector<16x100xi32>
    %2 = vector.broadcast %0 : vector<16x1xi32> to vector<16x100xi32>
    %3 = arith.cmpi eq, %1, %2 : vector<16x100xi32>
    %4 = arith.extui %3 : vector<16x100xi1> to vector<16x100xi32>
    %5 = arith.sitofp %4 : vector<16x100xi32> to vector<16x100xf32>
    %c0_1 = arith.constant 0 : index
    %c0_2 = arith.constant 0 : index
    %6 = vector.load %arg2[%c0_1, %c0_2] : memref<100x32xf32, #tpu.memory_space<vmem>>, vector<100x32xf32>
    %cst = arith.constant dense<0.000000e+00> : vector<16x32xf32>
    %7 = tpu.matmul %5, %6, %cst {dimension_numbers = #tpu.dot_dimension_numbers<[1], [0], [0], [1], [0, 0, 1, 1], [], []>} : vector<16x100xf32>, vector<100x32xf32>, vector<16x32xf32> -> vector<16x32xf32>
    %c0_3 = arith.constant 0 : index
    %c0_4 = arith.constant 0 : index
    %8 = vector.load %arg3[%c0_3, %c0_4] : memref<16x32xf32, #tpu.memory_space<vmem>>, vector<16x32xf32>
    %9 = arith.addf %7, %8 : vector<16x32xf32>
    %c0_5 = arith.constant 0 : index
    %c0_6 = arith.constant 0 : index
    %10 = vector.load %arg4[%c0_5, %c0_6] : memref<1x32xf32, #tpu.memory_space<vmem>>, vector<1x32xf32>
    %c0_7 = arith.constant 0 : index
    %c0_8 = arith.constant 0 : index
    %11 = vector.load %arg5[%c0_7, %c0_8] : memref<1x32xf32, #tpu.memory_space<vmem>>, vector<1x32xf32>
    %cst_9 = arith.constant dense<0.000000e+00> : vector<16xf32>
    %12 = vector.multi_reduction <add>, %9, %cst_9 [1] : vector<16x32xf32> to vector<16xf32>
    %13 = vector.shape_cast %12 : vector<16xf32> to vector<16x1xf32>
    %cst_10 = arith.constant 3.200000e+01 : f32
    %14 = vector.broadcast %cst_10 : f32 to vector<16x1xf32>
    %15 = arith.divf %13, %14 : vector<16x1xf32>
    %16 = vector.broadcast %15 : vector<16x1xf32> to vector<16x32xf32>
    %17 = arith.subf %9, %16 : vector<16x32xf32>
    %18 = arith.mulf %17, %17 : vector<16x32xf32>
    %cst_11 = arith.constant dense<0.000000e+00> : vector<16xf32>
    %19 = vector.multi_reduction <add>, %18, %cst_11 [1] : vector<16x32xf32> to vector<16xf32>
    %20 = vector.shape_cast %19 : vector<16xf32> to vector<16x1xf32>
    %cst_12 = arith.constant 3.200000e+01 : f32
    %21 = vector.broadcast %cst_12 : f32 to vector<16x1xf32>
    %22 = arith.divf %20, %21 : vector<16x1xf32>
    %23 = vector.broadcast %15 : vector<16x1xf32> to vector<16x32xf32>
    %24 = arith.subf %9, %23 : vector<16x32xf32>
    %cst_13 = arith.constant 9.99999996E-13 : f32
    %25 = vector.broadcast %cst_13 : f32 to vector<16x1xf32>
    %26 = arith.addf %22, %25 : vector<16x1xf32>
    %27 = math.rsqrt %26 : vector<16x1xf32>
    %28 = vector.broadcast %27 : vector<16x1xf32> to vector<16x32xf32>
    %29 = arith.mulf %24, %28 : vector<16x32xf32>
    %30 = vector.broadcast %10 : vector<1x32xf32> to vector<16x32xf32>
    %31 = arith.mulf %29, %30 : vector<16x32xf32>
    %32 = vector.broadcast %11 : vector<1x32xf32> to vector<16x32xf32>
    %33 = arith.addf %31, %32 : vector<16x32xf32>
    %34 = tpu.iota {dimensions = array<i32: 0>} : vector<16x16xi32>
    %35 = tpu.iota {dimensions = array<i32: 1>} : vector<16x16xi32>
    %c3_i32 = arith.constant 3 : i32
    %36 = vector.broadcast %c3_i32 : i32 to vector<16x16xi32>
    %37 = arith.shrsi %34, %36 : vector<16x16xi32>
    %c3_i32_14 = arith.constant 3 : i32
    %38 = vector.broadcast %c3_i32_14 : i32 to vector<16x16xi32>
    %39 = arith.shrsi %35, %38 : vector<16x16xi32>
    %40 = arith.cmpi eq, %37, %39 : vector<16x16xi32>
    %c0_15 = arith.constant 0 : index
    %c0_16 = arith.constant 0 : index
    %41 = vector.load %arg1[%c0_15, %c0_16] : memref<1x16xf32, #tpu.memory_space<vmem>>, vector<1x16xf32>
    %42 = vector.shape_cast %41 : vector<1x16xf32> to vector<1x16xf32>
    %43 = vector.broadcast %42 : vector<1x16xf32> to vector<16x16xf32>
    %cst_17 = arith.constant 5.000000e-01 : f32
    %44 = vector.broadcast %cst_17 : f32 to vector<16x16xf32>
    %45 = arith.cmpf ogt, %43, %44 : vector<16x16xf32>
    %46 = arith.andi %40, %45 : vector<16x16xi1>
    %cst_18 = arith.constant 0.000000e+00 : f32
    %cst_19 = arith.constant -1.000000e+09 : f32
    %47 = vector.broadcast %cst_18 : f32 to vector<16x16xf32>
    %48 = vector.broadcast %cst_19 : f32 to vector<16x16xf32>
    %49 = arith.select %46, %47, %48 : vector<16x16xi1>, vector<16x16xf32>
    %50 = arith.truncf %33 : vector<16x32xf32> to vector<16x32xbf16>
    %c0_20 = arith.constant 0 : index
    %c0_21 = arith.constant 0 : index
    %c0_22 = arith.constant 0 : index
    %51 = vector.load %arg6[%c0_20, %c0_21, %c0_22] : memref<2x32x96xbf16, #tpu.memory_space<vmem>>, vector<1x32x96xbf16>
    %52 = vector.shape_cast %51 : vector<1x32x96xbf16> to vector<32x96xbf16>
    %cst_23 = arith.constant dense<0.000000e+00> : vector<16x96xf32>
    %53 = tpu.matmul %50, %52, %cst_23 {dimension_numbers = #tpu.dot_dimension_numbers<[1], [0], [0], [1], [0, 0, 1, 1], [], []>} : vector<16x32xbf16>, vector<32x96xbf16>, vector<16x96xf32> -> vector<16x96xf32>
    %c0_24 = arith.constant 0 : index
    %c0_25 = arith.constant 0 : index
    %c0_26 = arith.constant 0 : index
    %54 = vector.load %arg7[%c0_24, %c0_25, %c0_26] : memref<2x1x96xf32, #tpu.memory_space<vmem>>, vector<1x1x96xf32>
    %55 = vector.shape_cast %54 : vector<1x1x96xf32> to vector<1x96xf32>
    %56 = vector.broadcast %55 : vector<1x96xf32> to vector<16x96xf32>
    %57 = arith.addf %53, %56 : vector<16x96xf32>
    %58 = vector.extract_strided_slice %57 {offsets = [0, 0], sizes = [16, 8], strides = [1, 1]} : vector<16x96xf32> to vector<16x8xf32>
    %59 = arith.truncf %58 : vector<16x8xf32> to vector<16x8xbf16>
    %60 = vector.extract_strided_slice %57 {offsets = [0, 32], sizes = [16, 8], strides = [1, 1]} : vector<16x96xf32> to vector<16x8xf32>
    %61 = arith.truncf %60 : vector<16x8xf32> to vector<16x8xbf16>
    %62 = vector.extract_strided_slice %57 {offsets = [0, 64], sizes = [16, 8], strides = [1, 1]} : vector<16x96xf32> to vector<16x8xf32>
    %63 = arith.truncf %62 : vector<16x8xf32> to vector<16x8xbf16>
    "tpu.trace_start"() <{level = 10 : i32, message = "qd,kd->qk"}> : () -> ()
    %cst_27 = arith.constant dense<0.000000e+00> : vector<16x16xf32>
    %64 = tpu.matmul %59, %61, %cst_27 {dimension_numbers = #tpu.dot_dimension_numbers<[1], [1], [0], [0], [0, 0, 1, 0], [], []>} : vector<16x8xbf16>, vector<16x8xbf16>, vector<16x16xf32> -> vector<16x16xf32>
    "tpu.trace_stop"() : () -> ()
    %65 = arith.addf %64, %49 : vector<16x16xf32>
    %cst_28 = arith.constant dense<0xFF800000> : vector<16xf32>
    %66 = vector.multi_reduction <maximumf>, %65, %cst_28 [1] : vector<16x16xf32> to vector<16xf32>
    %67 = vector.shape_cast %66 : vector<16xf32> to vector<16x1xf32>
    %68 = vector.broadcast %67 : vector<16x1xf32> to vector<16x16xf32>
    %69 = arith.subf %65, %68 : vector<16x16xf32>
    %70 = math.exp %69 : vector<16x16xf32>
    %cst_29 = arith.constant dense<0.000000e+00> : vector<16xf32>
    %71 = vector.multi_reduction <add>, %70, %cst_29 [1] : vector<16x16xf32> to vector<16xf32>
    %72 = vector.shape_cast %71 : vector<16xf32> to vector<16x1xf32>
    %73 = vector.broadcast %72 : vector<16x1xf32> to vector<16x16xf32>
    %74 = arith.divf %70, %73 : vector<16x16xf32>
    %75 = arith.truncf %74 : vector<16x16xf32> to vector<16x16xbf16>
    %cst_30 = arith.constant dense<0.000000e+00> : vector<16x8xf32>
    %76 = tpu.matmul %75, %63, %cst_30 {dimension_numbers = #tpu.dot_dimension_numbers<[1], [0], [0], [1], [0, 0, 1, 1], [], []>} : vector<16x16xbf16>, vector<16x8xbf16>, vector<16x8xf32> -> vector<16x8xf32>
    %77 = vector.extract_strided_slice %57 {offsets = [0, 8], sizes = [16, 8], strides = [1, 1]} : vector<16x96xf32> to vector<16x8xf32>
    %78 = arith.truncf %77 : vector<16x8xf32> to vector<16x8xbf16>
    %79 = vector.extract_strided_slice %57 {offsets = [0, 40], sizes = [16, 8], strides = [1, 1]} : vector<16x96xf32> to vector<16x8xf32>
    %80 = arith.truncf %79 : vector<16x8xf32> to vector<16x8xbf16>
    %81 = vector.extract_strided_slice %57 {offsets = [0, 72], sizes = [16, 8], strides = [1, 1]} : vector<16x96xf32> to vector<16x8xf32>
    %82 = arith.truncf %81 : vector<16x8xf32> to vector<16x8xbf16>
    "tpu.trace_start"() <{level = 10 : i32, message = "qd,kd->qk"}> : () -> ()
    %cst_31 = arith.constant dense<0.000000e+00> : vector<16x16xf32>
    %83 = tpu.matmul %78, %80, %cst_31 {dimension_numbers = #tpu.dot_dimension_numbers<[1], [1], [0], [0], [0, 0, 1, 0], [], []>} : vector<16x8xbf16>, vector<16x8xbf16>, vector<16x16xf32> -> vector<16x16xf32>
    "tpu.trace_stop"() : () -> ()
    %84 = arith.addf %83, %49 : vector<16x16xf32>
    %cst_32 = arith.constant dense<0xFF800000> : vector<16xf32>
    %85 = vector.multi_reduction <maximumf>, %84, %cst_32 [1] : vector<16x16xf32> to vector<16xf32>
    %86 = vector.shape_cast %85 : vector<16xf32> to vector<16x1xf32>
    %87 = vector.broadcast %86 : vector<16x1xf32> to vector<16x16xf32>
    %88 = arith.subf %84, %87 : vector<16x16xf32>
    %89 = math.exp %88 : vector<16x16xf32>
    %cst_33 = arith.constant dense<0.000000e+00> : vector<16xf32>
    %90 = vector.multi_reduction <add>, %89, %cst_33 [1] : vector<16x16xf32> to vector<16xf32>
    %91 = vector.shape_cast %90 : vector<16xf32> to vector<16x1xf32>
    %92 = vector.broadcast %91 : vector<16x1xf32> to vector<16x16xf32>
    %93 = arith.divf %89, %92 : vector<16x16xf32>
    %94 = arith.truncf %93 : vector<16x16xf32> to vector<16x16xbf16>
    %cst_34 = arith.constant dense<0.000000e+00> : vector<16x8xf32>
    %95 = tpu.matmul %94, %82, %cst_34 {dimension_numbers = #tpu.dot_dimension_numbers<[1], [0], [0], [1], [0, 0, 1, 1], [], []>} : vector<16x16xbf16>, vector<16x8xbf16>, vector<16x8xf32> -> vector<16x8xf32>
    %96 = vector.extract_strided_slice %57 {offsets = [0, 16], sizes = [16, 8], strides = [1, 1]} : vector<16x96xf32> to vector<16x8xf32>
    %97 = arith.truncf %96 : vector<16x8xf32> to vector<16x8xbf16>
    %98 = vector.extract_strided_slice %57 {offsets = [0, 48], sizes = [16, 8], strides = [1, 1]} : vector<16x96xf32> to vector<16x8xf32>
    %99 = arith.truncf %98 : vector<16x8xf32> to vector<16x8xbf16>
    %100 = vector.extract_strided_slice %57 {offsets = [0, 80], sizes = [16, 8], strides = [1, 1]} : vector<16x96xf32> to vector<16x8xf32>
    %101 = arith.truncf %100 : vector<16x8xf32> to vector<16x8xbf16>
    "tpu.trace_start"() <{level = 10 : i32, message = "qd,kd->qk"}> : () -> ()
    %cst_35 = arith.constant dense<0.000000e+00> : vector<16x16xf32>
    %102 = tpu.matmul %97, %99, %cst_35 {dimension_numbers = #tpu.dot_dimension_numbers<[1], [1], [0], [0], [0, 0, 1, 0], [], []>} : vector<16x8xbf16>, vector<16x8xbf16>, vector<16x16xf32> -> vector<16x16xf32>
    "tpu.trace_stop"() : () -> ()
    %103 = arith.addf %102, %49 : vector<16x16xf32>
    %cst_36 = arith.constant dense<0xFF800000> : vector<16xf32>
    %104 = vector.multi_reduction <maximumf>, %103, %cst_36 [1] : vector<16x16xf32> to vector<16xf32>
    %105 = vector.shape_cast %104 : vector<16xf32> to vector<16x1xf32>
    %106 = vector.broadcast %105 : vector<16x1xf32> to vector<16x16xf32>
    %107 = arith.subf %103, %106 : vector<16x16xf32>
    %108 = math.exp %107 : vector<16x16xf32>
    %cst_37 = arith.constant dense<0.000000e+00> : vector<16xf32>
    %109 = vector.multi_reduction <add>, %108, %cst_37 [1] : vector<16x16xf32> to vector<16xf32>
    %110 = vector.shape_cast %109 : vector<16xf32> to vector<16x1xf32>
    %111 = vector.broadcast %110 : vector<16x1xf32> to vector<16x16xf32>
    %112 = arith.divf %108, %111 : vector<16x16xf32>
    %113 = arith.truncf %112 : vector<16x16xf32> to vector<16x16xbf16>
    %cst_38 = arith.constant dense<0.000000e+00> : vector<16x8xf32>
    %114 = tpu.matmul %113, %101, %cst_38 {dimension_numbers = #tpu.dot_dimension_numbers<[1], [0], [0], [1], [0, 0, 1, 1], [], []>} : vector<16x16xbf16>, vector<16x8xbf16>, vector<16x8xf32> -> vector<16x8xf32>
    %115 = vector.extract_strided_slice %57 {offsets = [0, 24], sizes = [16, 8], strides = [1, 1]} : vector<16x96xf32> to vector<16x8xf32>
    %116 = arith.truncf %115 : vector<16x8xf32> to vector<16x8xbf16>
    %117 = vector.extract_strided_slice %57 {offsets = [0, 56], sizes = [16, 8], strides = [1, 1]} : vector<16x96xf32> to vector<16x8xf32>
    %118 = arith.truncf %117 : vector<16x8xf32> to vector<16x8xbf16>
    %119 = vector.extract_strided_slice %57 {offsets = [0, 88], sizes = [16, 8], strides = [1, 1]} : vector<16x96xf32> to vector<16x8xf32>
    %120 = arith.truncf %119 : vector<16x8xf32> to vector<16x8xbf16>
    "tpu.trace_start"() <{level = 10 : i32, message = "qd,kd->qk"}> : () -> ()
    %cst_39 = arith.constant dense<0.000000e+00> : vector<16x16xf32>
    %121 = tpu.matmul %116, %118, %cst_39 {dimension_numbers = #tpu.dot_dimension_numbers<[1], [1], [0], [0], [0, 0, 1, 0], [], []>} : vector<16x8xbf16>, vector<16x8xbf16>, vector<16x16xf32> -> vector<16x16xf32>
    "tpu.trace_stop"() : () -> ()
    %122 = arith.addf %121, %49 : vector<16x16xf32>
    %cst_40 = arith.constant dense<0xFF800000> : vector<16xf32>
    %123 = vector.multi_reduction <maximumf>, %122, %cst_40 [1] : vector<16x16xf32> to vector<16xf32>
    %124 = vector.shape_cast %123 : vector<16xf32> to vector<16x1xf32>
    %125 = vector.broadcast %124 : vector<16x1xf32> to vector<16x16xf32>
    %126 = arith.subf %122, %125 : vector<16x16xf32>
    %127 = math.exp %126 : vector<16x16xf32>
    %cst_41 = arith.constant dense<0.000000e+00> : vector<16xf32>
    %128 = vector.multi_reduction <add>, %127, %cst_41 [1] : vector<16x16xf32> to vector<16xf32>
    %129 = vector.shape_cast %128 : vector<16xf32> to vector<16x1xf32>
    %130 = vector.broadcast %129 : vector<16x1xf32> to vector<16x16xf32>
    %131 = arith.divf %127, %130 : vector<16x16xf32>
    %132 = arith.truncf %131 : vector<16x16xf32> to vector<16x16xbf16>
    %cst_42 = arith.constant dense<0.000000e+00> : vector<16x8xf32>
    %133 = tpu.matmul %132, %120, %cst_42 {dimension_numbers = #tpu.dot_dimension_numbers<[1], [0], [0], [1], [0, 0, 1, 1], [], []>} : vector<16x16xbf16>, vector<16x8xbf16>, vector<16x8xf32> -> vector<16x8xf32>
    %134 = tpu.concatenate %76, %95, %114, %133 in 1 : vector<16x8xf32>, vector<16x8xf32>, vector<16x8xf32>, vector<16x8xf32> -> vector<16x32xf32>
    %135 = arith.truncf %134 : vector<16x32xf32> to vector<16x32xbf16>
    %c0_43 = arith.constant 0 : index
    %c0_44 = arith.constant 0 : index
    %c0_45 = arith.constant 0 : index
    %136 = vector.load %arg8[%c0_43, %c0_44, %c0_45] : memref<2x32x32xbf16, #tpu.memory_space<vmem>>, vector<1x32x32xbf16>
    %137 = vector.shape_cast %136 : vector<1x32x32xbf16> to vector<32x32xbf16>
    %cst_46 = arith.constant dense<0.000000e+00> : vector<16x32xf32>
    %138 = tpu.matmul %135, %137, %cst_46 {dimension_numbers = #tpu.dot_dimension_numbers<[1], [0], [0], [1], [0, 0, 1, 1], [], []>} : vector<16x32xbf16>, vector<32x32xbf16>, vector<16x32xf32> -> vector<16x32xf32>
    %c0_47 = arith.constant 0 : index
    %c0_48 = arith.constant 0 : index
    %c0_49 = arith.constant 0 : index
    %139 = vector.load %arg9[%c0_47, %c0_48, %c0_49] : memref<2x1x32xf32, #tpu.memory_space<vmem>>, vector<1x1x32xf32>
    %140 = vector.shape_cast %139 : vector<1x1x32xf32> to vector<1x32xf32>
    %141 = vector.broadcast %140 : vector<1x32xf32> to vector<16x32xf32>
    %142 = arith.addf %138, %141 : vector<16x32xf32>
    %143 = arith.addf %33, %142 : vector<16x32xf32>
    %c0_50 = arith.constant 0 : index
    %c0_51 = arith.constant 0 : index
    %c0_52 = arith.constant 0 : index
    %144 = vector.load %arg10[%c0_50, %c0_51, %c0_52] : memref<2x1x32xf32, #tpu.memory_space<vmem>>, vector<1x1x32xf32>
    %145 = vector.shape_cast %144 : vector<1x1x32xf32> to vector<1x32xf32>
    %c0_53 = arith.constant 0 : index
    %c0_54 = arith.constant 0 : index
    %c0_55 = arith.constant 0 : index
    %146 = vector.load %arg11[%c0_53, %c0_54, %c0_55] : memref<2x1x32xf32, #tpu.memory_space<vmem>>, vector<1x1x32xf32>
    %147 = vector.shape_cast %146 : vector<1x1x32xf32> to vector<1x32xf32>
    %cst_56 = arith.constant dense<0.000000e+00> : vector<16xf32>
    %148 = vector.multi_reduction <add>, %143, %cst_56 [1] : vector<16x32xf32> to vector<16xf32>
    %149 = vector.shape_cast %148 : vector<16xf32> to vector<16x1xf32>
    %cst_57 = arith.constant 3.200000e+01 : f32
    %150 = vector.broadcast %cst_57 : f32 to vector<16x1xf32>
    %151 = arith.divf %149, %150 : vector<16x1xf32>
    %152 = vector.broadcast %151 : vector<16x1xf32> to vector<16x32xf32>
    %153 = arith.subf %143, %152 : vector<16x32xf32>
    %154 = arith.mulf %153, %153 : vector<16x32xf32>
    %cst_58 = arith.constant dense<0.000000e+00> : vector<16xf32>
    %155 = vector.multi_reduction <add>, %154, %cst_58 [1] : vector<16x32xf32> to vector<16xf32>
    %156 = vector.shape_cast %155 : vector<16xf32> to vector<16x1xf32>
    %cst_59 = arith.constant 3.200000e+01 : f32
    %157 = vector.broadcast %cst_59 : f32 to vector<16x1xf32>
    %158 = arith.divf %156, %157 : vector<16x1xf32>
    %159 = vector.broadcast %151 : vector<16x1xf32> to vector<16x32xf32>
    %160 = arith.subf %143, %159 : vector<16x32xf32>
    %cst_60 = arith.constant 9.99999996E-13 : f32
    %161 = vector.broadcast %cst_60 : f32 to vector<16x1xf32>
    %162 = arith.addf %158, %161 : vector<16x1xf32>
    %163 = math.rsqrt %162 : vector<16x1xf32>
    %164 = vector.broadcast %163 : vector<16x1xf32> to vector<16x32xf32>
    %165 = arith.mulf %160, %164 : vector<16x32xf32>
    %166 = vector.broadcast %145 : vector<1x32xf32> to vector<16x32xf32>
    %167 = arith.mulf %165, %166 : vector<16x32xf32>
    %168 = vector.broadcast %147 : vector<1x32xf32> to vector<16x32xf32>
    %169 = arith.addf %167, %168 : vector<16x32xf32>
    %170 = arith.truncf %169 : vector<16x32xf32> to vector<16x32xbf16>
    %c0_61 = arith.constant 0 : index
    %c0_62 = arith.constant 0 : index
    %c0_63 = arith.constant 0 : index
    %171 = vector.load %arg12[%c0_61, %c0_62, %c0_63] : memref<2x32x64xbf16, #tpu.memory_space<vmem>>, vector<1x32x64xbf16>
    %172 = vector.shape_cast %171 : vector<1x32x64xbf16> to vector<32x64xbf16>
    %cst_64 = arith.constant dense<0.000000e+00> : vector<16x64xf32>
    %173 = tpu.matmul %170, %172, %cst_64 {dimension_numbers = #tpu.dot_dimension_numbers<[1], [0], [0], [1], [0, 0, 1, 1], [], []>} : vector<16x32xbf16>, vector<32x64xbf16>, vector<16x64xf32> -> vector<16x64xf32>
    %c0_65 = arith.constant 0 : index
    %c0_66 = arith.constant 0 : index
    %c0_67 = arith.constant 0 : index
    %174 = vector.load %arg13[%c0_65, %c0_66, %c0_67] : memref<2x1x64xf32, #tpu.memory_space<vmem>>, vector<1x1x64xf32>
    %175 = vector.shape_cast %174 : vector<1x1x64xf32> to vector<1x64xf32>
    %176 = vector.broadcast %175 : vector<1x64xf32> to vector<16x64xf32>
    %177 = arith.addf %173, %176 : vector<16x64xf32>
    %cst_68 = arith.constant 5.000000e-01 : f32
    %178 = vector.broadcast %cst_68 : f32 to vector<16x64xf32>
    %179 = arith.mulf %178, %177 : vector<16x64xf32>
    %cst_69 = arith.constant 4.471500e-02 : f32
    %180 = vector.broadcast %cst_69 : f32 to vector<16x64xf32>
    %181 = arith.mulf %180, %177 : vector<16x64xf32>
    %182 = arith.mulf %181, %177 : vector<16x64xf32>
    %183 = arith.mulf %182, %177 : vector<16x64xf32>
    %184 = arith.addf %177, %183 : vector<16x64xf32>
    %cst_70 = arith.constant 0.797884583 : f32
    %185 = vector.broadcast %cst_70 : f32 to vector<16x64xf32>
    %186 = arith.mulf %185, %184 : vector<16x64xf32>
    %187 = math.tanh %186 : vector<16x64xf32>
    %cst_71 = arith.constant 1.000000e+00 : f32
    %188 = vector.broadcast %cst_71 : f32 to vector<16x64xf32>
    %189 = arith.addf %188, %187 : vector<16x64xf32>
    %190 = arith.mulf %179, %189 : vector<16x64xf32>
    %191 = arith.truncf %190 : vector<16x64xf32> to vector<16x64xbf16>
    %c0_72 = arith.constant 0 : index
    %c0_73 = arith.constant 0 : index
    %c0_74 = arith.constant 0 : index
    %192 = vector.load %arg14[%c0_72, %c0_73, %c0_74] : memref<2x64x32xbf16, #tpu.memory_space<vmem>>, vector<1x64x32xbf16>
    %193 = vector.shape_cast %192 : vector<1x64x32xbf16> to vector<64x32xbf16>
    %cst_75 = arith.constant dense<0.000000e+00> : vector<16x32xf32>
    %194 = tpu.matmul %191, %193, %cst_75 {dimension_numbers = #tpu.dot_dimension_numbers<[1], [0], [0], [1], [0, 0, 1, 1], [], []>} : vector<16x64xbf16>, vector<64x32xbf16>, vector<16x32xf32> -> vector<16x32xf32>
    %c0_76 = arith.constant 0 : index
    %c0_77 = arith.constant 0 : index
    %c0_78 = arith.constant 0 : index
    %195 = vector.load %arg15[%c0_76, %c0_77, %c0_78] : memref<2x1x32xf32, #tpu.memory_space<vmem>>, vector<1x1x32xf32>
    %196 = vector.shape_cast %195 : vector<1x1x32xf32> to vector<1x32xf32>
    %197 = vector.broadcast %196 : vector<1x32xf32> to vector<16x32xf32>
    %198 = arith.addf %194, %197 : vector<16x32xf32>
    %199 = arith.addf %169, %198 : vector<16x32xf32>
    %c0_79 = arith.constant 0 : index
    %c0_80 = arith.constant 0 : index
    %c0_81 = arith.constant 0 : index
    %200 = vector.load %arg16[%c0_79, %c0_80, %c0_81] : memref<2x1x32xf32, #tpu.memory_space<vmem>>, vector<1x1x32xf32>
    %201 = vector.shape_cast %200 : vector<1x1x32xf32> to vector<1x32xf32>
    %c0_82 = arith.constant 0 : index
    %c0_83 = arith.constant 0 : index
    %c0_84 = arith.constant 0 : index
    %202 = vector.load %arg17[%c0_82, %c0_83, %c0_84] : memref<2x1x32xf32, #tpu.memory_space<vmem>>, vector<1x1x32xf32>
    %203 = vector.shape_cast %202 : vector<1x1x32xf32> to vector<1x32xf32>
    %cst_85 = arith.constant dense<0.000000e+00> : vector<16xf32>
    %204 = vector.multi_reduction <add>, %199, %cst_85 [1] : vector<16x32xf32> to vector<16xf32>
    %205 = vector.shape_cast %204 : vector<16xf32> to vector<16x1xf32>
    %cst_86 = arith.constant 3.200000e+01 : f32
    %206 = vector.broadcast %cst_86 : f32 to vector<16x1xf32>
    %207 = arith.divf %205, %206 : vector<16x1xf32>
    %208 = vector.broadcast %207 : vector<16x1xf32> to vector<16x32xf32>
    %209 = arith.subf %199, %208 : vector<16x32xf32>
    %210 = arith.mulf %209, %209 : vector<16x32xf32>
    %cst_87 = arith.constant dense<0.000000e+00> : vector<16xf32>
    %211 = vector.multi_reduction <add>, %210, %cst_87 [1] : vector<16x32xf32> to vector<16xf32>
    %212 = vector.shape_cast %211 : vector<16xf32> to vector<16x1xf32>
    %cst_88 = arith.constant 3.200000e+01 : f32
    %213 = vector.broadcast %cst_88 : f32 to vector<16x1xf32>
    %214 = arith.divf %212, %213 : vector<16x1xf32>
    %215 = vector.broadcast %207 : vector<16x1xf32> to vector<16x32xf32>
    %216 = arith.subf %199, %215 : vector<16x32xf32>
    %cst_89 = arith.constant 9.99999996E-13 : f32
    %217 = vector.broadcast %cst_89 : f32 to vector<16x1xf32>
    %218 = arith.addf %214, %217 : vector<16x1xf32>
    %219 = math.rsqrt %218 : vector<16x1xf32>
    %220 = vector.broadcast %219 : vector<16x1xf32> to vector<16x32xf32>
    %221 = arith.mulf %216, %220 : vector<16x32xf32>
    %222 = vector.broadcast %201 : vector<1x32xf32> to vector<16x32xf32>
    %223 = arith.mulf %221, %222 : vector<16x32xf32>
    %224 = vector.broadcast %203 : vector<1x32xf32> to vector<16x32xf32>
    %225 = arith.addf %223, %224 : vector<16x32xf32>
    %226 = arith.truncf %225 : vector<16x32xf32> to vector<16x32xbf16>
    %c1 = arith.constant 1 : index
    %c0_90 = arith.constant 0 : index
    %c0_91 = arith.constant 0 : index
    %227 = vector.load %arg6[%c1, %c0_90, %c0_91] : memref<2x32x96xbf16, #tpu.memory_space<vmem>>, vector<1x32x96xbf16>
    %228 = vector.shape_cast %227 : vector<1x32x96xbf16> to vector<32x96xbf16>
    %cst_92 = arith.constant dense<0.000000e+00> : vector<16x96xf32>
    %229 = tpu.matmul %226, %228, %cst_92 {dimension_numbers = #tpu.dot_dimension_numbers<[1], [0], [0], [1], [0, 0, 1, 1], [], []>} : vector<16x32xbf16>, vector<32x96xbf16>, vector<16x96xf32> -> vector<16x96xf32>
    %c1_93 = arith.constant 1 : index
    %c0_94 = arith.constant 0 : index
    %c0_95 = arith.constant 0 : index
    %230 = vector.load %arg7[%c1_93, %c0_94, %c0_95] : memref<2x1x96xf32, #tpu.memory_space<vmem>>, vector<1x1x96xf32>
    %231 = vector.shape_cast %230 : vector<1x1x96xf32> to vector<1x96xf32>
    %232 = vector.broadcast %231 : vector<1x96xf32> to vector<16x96xf32>
    %233 = arith.addf %229, %232 : vector<16x96xf32>
    %234 = vector.extract_strided_slice %233 {offsets = [0, 0], sizes = [16, 8], strides = [1, 1]} : vector<16x96xf32> to vector<16x8xf32>
    %235 = arith.truncf %234 : vector<16x8xf32> to vector<16x8xbf16>
    %236 = vector.extract_strided_slice %233 {offsets = [0, 32], sizes = [16, 8], strides = [1, 1]} : vector<16x96xf32> to vector<16x8xf32>
    %237 = arith.truncf %236 : vector<16x8xf32> to vector<16x8xbf16>
    %238 = vector.extract_strided_slice %233 {offsets = [0, 64], sizes = [16, 8], strides = [1, 1]} : vector<16x96xf32> to vector<16x8xf32>
    %239 = arith.truncf %238 : vector<16x8xf32> to vector<16x8xbf16>
    "tpu.trace_start"() <{level = 10 : i32, message = "qd,kd->qk"}> : () -> ()
    %cst_96 = arith.constant dense<0.000000e+00> : vector<16x16xf32>
    %240 = tpu.matmul %235, %237, %cst_96 {dimension_numbers = #tpu.dot_dimension_numbers<[1], [1], [0], [0], [0, 0, 1, 0], [], []>} : vector<16x8xbf16>, vector<16x8xbf16>, vector<16x16xf32> -> vector<16x16xf32>
    "tpu.trace_stop"() : () -> ()
    %241 = arith.addf %240, %49 : vector<16x16xf32>
    %cst_97 = arith.constant dense<0xFF800000> : vector<16xf32>
    %242 = vector.multi_reduction <maximumf>, %241, %cst_97 [1] : vector<16x16xf32> to vector<16xf32>
    %243 = vector.shape_cast %242 : vector<16xf32> to vector<16x1xf32>
    %244 = vector.broadcast %243 : vector<16x1xf32> to vector<16x16xf32>
    %245 = arith.subf %241, %244 : vector<16x16xf32>
    %246 = math.exp %245 : vector<16x16xf32>
    %cst_98 = arith.constant dense<0.000000e+00> : vector<16xf32>
    %247 = vector.multi_reduction <add>, %246, %cst_98 [1] : vector<16x16xf32> to vector<16xf32>
    %248 = vector.shape_cast %247 : vector<16xf32> to vector<16x1xf32>
    %249 = vector.broadcast %248 : vector<16x1xf32> to vector<16x16xf32>
    %250 = arith.divf %246, %249 : vector<16x16xf32>
    %251 = arith.truncf %250 : vector<16x16xf32> to vector<16x16xbf16>
    %cst_99 = arith.constant dense<0.000000e+00> : vector<16x8xf32>
    %252 = tpu.matmul %251, %239, %cst_99 {dimension_numbers = #tpu.dot_dimension_numbers<[1], [0], [0], [1], [0, 0, 1, 1], [], []>} : vector<16x16xbf16>, vector<16x8xbf16>, vector<16x8xf32> -> vector<16x8xf32>
    %253 = vector.extract_strided_slice %233 {offsets = [0, 8], sizes = [16, 8], strides = [1, 1]} : vector<16x96xf32> to vector<16x8xf32>
    %254 = arith.truncf %253 : vector<16x8xf32> to vector<16x8xbf16>
    %255 = vector.extract_strided_slice %233 {offsets = [0, 40], sizes = [16, 8], strides = [1, 1]} : vector<16x96xf32> to vector<16x8xf32>
    %256 = arith.truncf %255 : vector<16x8xf32> to vector<16x8xbf16>
    %257 = vector.extract_strided_slice %233 {offsets = [0, 72], sizes = [16, 8], strides = [1, 1]} : vector<16x96xf32> to vector<16x8xf32>
    %258 = arith.truncf %257 : vector<16x8xf32> to vector<16x8xbf16>
    "tpu.trace_start"() <{level = 10 : i32, message = "qd,kd->qk"}> : () -> ()
    %cst_100 = arith.constant dense<0.000000e+00> : vector<16x16xf32>
    %259 = tpu.matmul %254, %256, %cst_100 {dimension_numbers = #tpu.dot_dimension_numbers<[1], [1], [0], [0], [0, 0, 1, 0], [], []>} : vector<16x8xbf16>, vector<16x8xbf16>, vector<16x16xf32> -> vector<16x16xf32>
    "tpu.trace_stop"() : () -> ()
    %260 = arith.addf %259, %49 : vector<16x16xf32>
    %cst_101 = arith.constant dense<0xFF800000> : vector<16xf32>
    %261 = vector.multi_reduction <maximumf>, %260, %cst_101 [1] : vector<16x16xf32> to vector<16xf32>
    %262 = vector.shape_cast %261 : vector<16xf32> to vector<16x1xf32>
    %263 = vector.broadcast %262 : vector<16x1xf32> to vector<16x16xf32>
    %264 = arith.subf %260, %263 : vector<16x16xf32>
    %265 = math.exp %264 : vector<16x16xf32>
    %cst_102 = arith.constant dense<0.000000e+00> : vector<16xf32>
    %266 = vector.multi_reduction <add>, %265, %cst_102 [1] : vector<16x16xf32> to vector<16xf32>
    %267 = vector.shape_cast %266 : vector<16xf32> to vector<16x1xf32>
    %268 = vector.broadcast %267 : vector<16x1xf32> to vector<16x16xf32>
    %269 = arith.divf %265, %268 : vector<16x16xf32>
    %270 = arith.truncf %269 : vector<16x16xf32> to vector<16x16xbf16>
    %cst_103 = arith.constant dense<0.000000e+00> : vector<16x8xf32>
    %271 = tpu.matmul %270, %258, %cst_103 {dimension_numbers = #tpu.dot_dimension_numbers<[1], [0], [0], [1], [0, 0, 1, 1], [], []>} : vector<16x16xbf16>, vector<16x8xbf16>, vector<16x8xf32> -> vector<16x8xf32>
    %272 = vector.extract_strided_slice %233 {offsets = [0, 16], sizes = [16, 8], strides = [1, 1]} : vector<16x96xf32> to vector<16x8xf32>
    %273 = arith.truncf %272 : vector<16x8xf32> to vector<16x8xbf16>
    %274 = vector.extract_strided_slice %233 {offsets = [0, 48], sizes = [16, 8], strides = [1, 1]} : vector<16x96xf32> to vector<16x8xf32>
    %275 = arith.truncf %274 : vector<16x8xf32> to vector<16x8xbf16>
    %276 = vector.extract_strided_slice %233 {offsets = [0, 80], sizes = [16, 8], strides = [1, 1]} : vector<16x96xf32> to vector<16x8xf32>
    %277 = arith.truncf %276 : vector<16x8xf32> to vector<16x8xbf16>
    "tpu.trace_start"() <{level = 10 : i32, message = "qd,kd->qk"}> : () -> ()
    %cst_104 = arith.constant dense<0.000000e+00> : vector<16x16xf32>
    %278 = tpu.matmul %273, %275, %cst_104 {dimension_numbers = #tpu.dot_dimension_numbers<[1], [1], [0], [0], [0, 0, 1, 0], [], []>} : vector<16x8xbf16>, vector<16x8xbf16>, vector<16x16xf32> -> vector<16x16xf32>
    "tpu.trace_stop"() : () -> ()
    %279 = arith.addf %278, %49 : vector<16x16xf32>
    %cst_105 = arith.constant dense<0xFF800000> : vector<16xf32>
    %280 = vector.multi_reduction <maximumf>, %279, %cst_105 [1] : vector<16x16xf32> to vector<16xf32>
    %281 = vector.shape_cast %280 : vector<16xf32> to vector<16x1xf32>
    %282 = vector.broadcast %281 : vector<16x1xf32> to vector<16x16xf32>
    %283 = arith.subf %279, %282 : vector<16x16xf32>
    %284 = math.exp %283 : vector<16x16xf32>
    %cst_106 = arith.constant dense<0.000000e+00> : vector<16xf32>
    %285 = vector.multi_reduction <add>, %284, %cst_106 [1] : vector<16x16xf32> to vector<16xf32>
    %286 = vector.shape_cast %285 : vector<16xf32> to vector<16x1xf32>
    %287 = vector.broadcast %286 : vector<16x1xf32> to vector<16x16xf32>
    %288 = arith.divf %284, %287 : vector<16x16xf32>
    %289 = arith.truncf %288 : vector<16x16xf32> to vector<16x16xbf16>
    %cst_107 = arith.constant dense<0.000000e+00> : vector<16x8xf32>
    %290 = tpu.matmul %289, %277, %cst_107 {dimension_numbers = #tpu.dot_dimension_numbers<[1], [0], [0], [1], [0, 0, 1, 1], [], []>} : vector<16x16xbf16>, vector<16x8xbf16>, vector<16x8xf32> -> vector<16x8xf32>
    %291 = vector.extract_strided_slice %233 {offsets = [0, 24], sizes = [16, 8], strides = [1, 1]} : vector<16x96xf32> to vector<16x8xf32>
    %292 = arith.truncf %291 : vector<16x8xf32> to vector<16x8xbf16>
    %293 = vector.extract_strided_slice %233 {offsets = [0, 56], sizes = [16, 8], strides = [1, 1]} : vector<16x96xf32> to vector<16x8xf32>
    %294 = arith.truncf %293 : vector<16x8xf32> to vector<16x8xbf16>
    %295 = vector.extract_strided_slice %233 {offsets = [0, 88], sizes = [16, 8], strides = [1, 1]} : vector<16x96xf32> to vector<16x8xf32>
    %296 = arith.truncf %295 : vector<16x8xf32> to vector<16x8xbf16>
    "tpu.trace_start"() <{level = 10 : i32, message = "qd,kd->qk"}> : () -> ()
    %cst_108 = arith.constant dense<0.000000e+00> : vector<16x16xf32>
    %297 = tpu.matmul %292, %294, %cst_108 {dimension_numbers = #tpu.dot_dimension_numbers<[1], [1], [0], [0], [0, 0, 1, 0], [], []>} : vector<16x8xbf16>, vector<16x8xbf16>, vector<16x16xf32> -> vector<16x16xf32>
    "tpu.trace_stop"() : () -> ()
    %298 = arith.addf %297, %49 : vector<16x16xf32>
    %cst_109 = arith.constant dense<0xFF800000> : vector<16xf32>
    %299 = vector.multi_reduction <maximumf>, %298, %cst_109 [1] : vector<16x16xf32> to vector<16xf32>
    %300 = vector.shape_cast %299 : vector<16xf32> to vector<16x1xf32>
    %301 = vector.broadcast %300 : vector<16x1xf32> to vector<16x16xf32>
    %302 = arith.subf %298, %301 : vector<16x16xf32>
    %303 = math.exp %302 : vector<16x16xf32>
    %cst_110 = arith.constant dense<0.000000e+00> : vector<16xf32>
    %304 = vector.multi_reduction <add>, %303, %cst_110 [1] : vector<16x16xf32> to vector<16xf32>
    %305 = vector.shape_cast %304 : vector<16xf32> to vector<16x1xf32>
    %306 = vector.broadcast %305 : vector<16x1xf32> to vector<16x16xf32>
    %307 = arith.divf %303, %306 : vector<16x16xf32>
    %308 = arith.truncf %307 : vector<16x16xf32> to vector<16x16xbf16>
    %cst_111 = arith.constant dense<0.000000e+00> : vector<16x8xf32>
    %309 = tpu.matmul %308, %296, %cst_111 {dimension_numbers = #tpu.dot_dimension_numbers<[1], [0], [0], [1], [0, 0, 1, 1], [], []>} : vector<16x16xbf16>, vector<16x8xbf16>, vector<16x8xf32> -> vector<16x8xf32>
    %310 = tpu.concatenate %252, %271, %290, %309 in 1 : vector<16x8xf32>, vector<16x8xf32>, vector<16x8xf32>, vector<16x8xf32> -> vector<16x32xf32>
    %311 = arith.truncf %310 : vector<16x32xf32> to vector<16x32xbf16>
    %c1_112 = arith.constant 1 : index
    %c0_113 = arith.constant 0 : index
    %c0_114 = arith.constant 0 : index
    %312 = vector.load %arg8[%c1_112, %c0_113, %c0_114] : memref<2x32x32xbf16, #tpu.memory_space<vmem>>, vector<1x32x32xbf16>
    %313 = vector.shape_cast %312 : vector<1x32x32xbf16> to vector<32x32xbf16>
    %cst_115 = arith.constant dense<0.000000e+00> : vector<16x32xf32>
    %314 = tpu.matmul %311, %313, %cst_115 {dimension_numbers = #tpu.dot_dimension_numbers<[1], [0], [0], [1], [0, 0, 1, 1], [], []>} : vector<16x32xbf16>, vector<32x32xbf16>, vector<16x32xf32> -> vector<16x32xf32>
    %c1_116 = arith.constant 1 : index
    %c0_117 = arith.constant 0 : index
    %c0_118 = arith.constant 0 : index
    %315 = vector.load %arg9[%c1_116, %c0_117, %c0_118] : memref<2x1x32xf32, #tpu.memory_space<vmem>>, vector<1x1x32xf32>
    %316 = vector.shape_cast %315 : vector<1x1x32xf32> to vector<1x32xf32>
    %317 = vector.broadcast %316 : vector<1x32xf32> to vector<16x32xf32>
    %318 = arith.addf %314, %317 : vector<16x32xf32>
    %319 = arith.addf %225, %318 : vector<16x32xf32>
    %c1_119 = arith.constant 1 : index
    %c0_120 = arith.constant 0 : index
    %c0_121 = arith.constant 0 : index
    %320 = vector.load %arg10[%c1_119, %c0_120, %c0_121] : memref<2x1x32xf32, #tpu.memory_space<vmem>>, vector<1x1x32xf32>
    %321 = vector.shape_cast %320 : vector<1x1x32xf32> to vector<1x32xf32>
    %c1_122 = arith.constant 1 : index
    %c0_123 = arith.constant 0 : index
    %c0_124 = arith.constant 0 : index
    %322 = vector.load %arg11[%c1_122, %c0_123, %c0_124] : memref<2x1x32xf32, #tpu.memory_space<vmem>>, vector<1x1x32xf32>
    %323 = vector.shape_cast %322 : vector<1x1x32xf32> to vector<1x32xf32>
    %cst_125 = arith.constant dense<0.000000e+00> : vector<16xf32>
    %324 = vector.multi_reduction <add>, %319, %cst_125 [1] : vector<16x32xf32> to vector<16xf32>
    %325 = vector.shape_cast %324 : vector<16xf32> to vector<16x1xf32>
    %cst_126 = arith.constant 3.200000e+01 : f32
    %326 = vector.broadcast %cst_126 : f32 to vector<16x1xf32>
    %327 = arith.divf %325, %326 : vector<16x1xf32>
    %328 = vector.broadcast %327 : vector<16x1xf32> to vector<16x32xf32>
    %329 = arith.subf %319, %328 : vector<16x32xf32>
    %330 = arith.mulf %329, %329 : vector<16x32xf32>
    %cst_127 = arith.constant dense<0.000000e+00> : vector<16xf32>
    %331 = vector.multi_reduction <add>, %330, %cst_127 [1] : vector<16x32xf32> to vector<16xf32>
    %332 = vector.shape_cast %331 : vector<16xf32> to vector<16x1xf32>
    %cst_128 = arith.constant 3.200000e+01 : f32
    %333 = vector.broadcast %cst_128 : f32 to vector<16x1xf32>
    %334 = arith.divf %332, %333 : vector<16x1xf32>
    %335 = vector.broadcast %327 : vector<16x1xf32> to vector<16x32xf32>
    %336 = arith.subf %319, %335 : vector<16x32xf32>
    %cst_129 = arith.constant 9.99999996E-13 : f32
    %337 = vector.broadcast %cst_129 : f32 to vector<16x1xf32>
    %338 = arith.addf %334, %337 : vector<16x1xf32>
    %339 = math.rsqrt %338 : vector<16x1xf32>
    %340 = vector.broadcast %339 : vector<16x1xf32> to vector<16x32xf32>
    %341 = arith.mulf %336, %340 : vector<16x32xf32>
    %342 = vector.broadcast %321 : vector<1x32xf32> to vector<16x32xf32>
    %343 = arith.mulf %341, %342 : vector<16x32xf32>
    %344 = vector.broadcast %323 : vector<1x32xf32> to vector<16x32xf32>
    %345 = arith.addf %343, %344 : vector<16x32xf32>
    %346 = arith.truncf %345 : vector<16x32xf32> to vector<16x32xbf16>
    %c1_130 = arith.constant 1 : index
    %c0_131 = arith.constant 0 : index
    %c0_132 = arith.constant 0 : index
    %347 = vector.load %arg12[%c1_130, %c0_131, %c0_132] : memref<2x32x64xbf16, #tpu.memory_space<vmem>>, vector<1x32x64xbf16>
    %348 = vector.shape_cast %347 : vector<1x32x64xbf16> to vector<32x64xbf16>
    %cst_133 = arith.constant dense<0.000000e+00> : vector<16x64xf32>
    %349 = tpu.matmul %346, %348, %cst_133 {dimension_numbers = #tpu.dot_dimension_numbers<[1], [0], [0], [1], [0, 0, 1, 1], [], []>} : vector<16x32xbf16>, vector<32x64xbf16>, vector<16x64xf32> -> vector<16x64xf32>
    %c1_134 = arith.constant 1 : index
    %c0_135 = arith.constant 0 : index
    %c0_136 = arith.constant 0 : index
    %350 = vector.load %arg13[%c1_134, %c0_135, %c0_136] : memref<2x1x64xf32, #tpu.memory_space<vmem>>, vector<1x1x64xf32>
    %351 = vector.shape_cast %350 : vector<1x1x64xf32> to vector<1x64xf32>
    %352 = vector.broadcast %351 : vector<1x64xf32> to vector<16x64xf32>
    %353 = arith.addf %349, %352 : vector<16x64xf32>
    %cst_137 = arith.constant 5.000000e-01 : f32
    %354 = vector.broadcast %cst_137 : f32 to vector<16x64xf32>
    %355 = arith.mulf %354, %353 : vector<16x64xf32>
    %cst_138 = arith.constant 4.471500e-02 : f32
    %356 = vector.broadcast %cst_138 : f32 to vector<16x64xf32>
    %357 = arith.mulf %356, %353 : vector<16x64xf32>
    %358 = arith.mulf %357, %353 : vector<16x64xf32>
    %359 = arith.mulf %358, %353 : vector<16x64xf32>
    %360 = arith.addf %353, %359 : vector<16x64xf32>
    %cst_139 = arith.constant 0.797884583 : f32
    %361 = vector.broadcast %cst_139 : f32 to vector<16x64xf32>
    %362 = arith.mulf %361, %360 : vector<16x64xf32>
    %363 = math.tanh %362 : vector<16x64xf32>
    %cst_140 = arith.constant 1.000000e+00 : f32
    %364 = vector.broadcast %cst_140 : f32 to vector<16x64xf32>
    %365 = arith.addf %364, %363 : vector<16x64xf32>
    %366 = arith.mulf %355, %365 : vector<16x64xf32>
    %367 = arith.truncf %366 : vector<16x64xf32> to vector<16x64xbf16>
    %c1_141 = arith.constant 1 : index
    %c0_142 = arith.constant 0 : index
    %c0_143 = arith.constant 0 : index
    %368 = vector.load %arg14[%c1_141, %c0_142, %c0_143] : memref<2x64x32xbf16, #tpu.memory_space<vmem>>, vector<1x64x32xbf16>
    %369 = vector.shape_cast %368 : vector<1x64x32xbf16> to vector<64x32xbf16>
    %cst_144 = arith.constant dense<0.000000e+00> : vector<16x32xf32>
    %370 = tpu.matmul %367, %369, %cst_144 {dimension_numbers = #tpu.dot_dimension_numbers<[1], [0], [0], [1], [0, 0, 1, 1], [], []>} : vector<16x64xbf16>, vector<64x32xbf16>, vector<16x32xf32> -> vector<16x32xf32>
    %c1_145 = arith.constant 1 : index
    %c0_146 = arith.constant 0 : index
    %c0_147 = arith.constant 0 : index
    %371 = vector.load %arg15[%c1_145, %c0_146, %c0_147] : memref<2x1x32xf32, #tpu.memory_space<vmem>>, vector<1x1x32xf32>
    %372 = vector.shape_cast %371 : vector<1x1x32xf32> to vector<1x32xf32>
    %373 = vector.broadcast %372 : vector<1x32xf32> to vector<16x32xf32>
    %374 = arith.addf %370, %373 : vector<16x32xf32>
    %375 = arith.addf %345, %374 : vector<16x32xf32>
    %c1_148 = arith.constant 1 : index
    %c0_149 = arith.constant 0 : index
    %c0_150 = arith.constant 0 : index
    %376 = vector.load %arg16[%c1_148, %c0_149, %c0_150] : memref<2x1x32xf32, #tpu.memory_space<vmem>>, vector<1x1x32xf32>
    %377 = vector.shape_cast %376 : vector<1x1x32xf32> to vector<1x32xf32>
    %c1_151 = arith.constant 1 : index
    %c0_152 = arith.constant 0 : index
    %c0_153 = arith.constant 0 : index
    %378 = vector.load %arg17[%c1_151, %c0_152, %c0_153] : memref<2x1x32xf32, #tpu.memory_space<vmem>>, vector<1x1x32xf32>
    %379 = vector.shape_cast %378 : vector<1x1x32xf32> to vector<1x32xf32>
    %cst_154 = arith.constant dense<0.000000e+00> : vector<16xf32>
    %380 = vector.multi_reduction <add>, %375, %cst_154 [1] : vector<16x32xf32> to vector<16xf32>
    %381 = vector.shape_cast %380 : vector<16xf32> to vector<16x1xf32>
    %cst_155 = arith.constant 3.200000e+01 : f32
    %382 = vector.broadcast %cst_155 : f32 to vector<16x1xf32>
    %383 = arith.divf %381, %382 : vector<16x1xf32>
    %384 = vector.broadcast %383 : vector<16x1xf32> to vector<16x32xf32>
    %385 = arith.subf %375, %384 : vector<16x32xf32>
    %386 = arith.mulf %385, %385 : vector<16x32xf32>
    %cst_156 = arith.constant dense<0.000000e+00> : vector<16xf32>
    %387 = vector.multi_reduction <add>, %386, %cst_156 [1] : vector<16x32xf32> to vector<16xf32>
    %388 = vector.shape_cast %387 : vector<16xf32> to vector<16x1xf32>
    %cst_157 = arith.constant 3.200000e+01 : f32
    %389 = vector.broadcast %cst_157 : f32 to vector<16x1xf32>
    %390 = arith.divf %388, %389 : vector<16x1xf32>
    %391 = vector.broadcast %383 : vector<16x1xf32> to vector<16x32xf32>
    %392 = arith.subf %375, %391 : vector<16x32xf32>
    %cst_158 = arith.constant 9.99999996E-13 : f32
    %393 = vector.broadcast %cst_158 : f32 to vector<16x1xf32>
    %394 = arith.addf %390, %393 : vector<16x1xf32>
    %395 = math.rsqrt %394 : vector<16x1xf32>
    %396 = vector.broadcast %395 : vector<16x1xf32> to vector<16x32xf32>
    %397 = arith.mulf %392, %396 : vector<16x32xf32>
    %398 = vector.broadcast %377 : vector<1x32xf32> to vector<16x32xf32>
    %399 = arith.mulf %397, %398 : vector<16x32xf32>
    %400 = vector.broadcast %379 : vector<1x32xf32> to vector<16x32xf32>
    %401 = arith.addf %399, %400 : vector<16x32xf32>
    %402 = vector.extract_strided_slice %401 {offsets = [0, 0], sizes = [1, 32], strides = [1, 1]} : vector<16x32xf32> to vector<1x32xf32>
    %403 = vector.extract_strided_slice %401 {offsets = [8, 0], sizes = [1, 32], strides = [1, 1]} : vector<16x32xf32> to vector<1x32xf32>
    %404 = tpu.concatenate %402, %403 in 0 : vector<1x32xf32>, vector<1x32xf32> -> vector<2x32xf32>
    %c0_159 = arith.constant 0 : index
    %c0_160 = arith.constant 0 : index
    %405 = vector.load %arg18[%c0_159, %c0_160] : memref<1x32xf32, #tpu.memory_space<vmem>>, vector<1x32xf32>
    %406 = vector.broadcast %405 : vector<1x32xf32> to vector<2x32xf32>
    %407 = arith.mulf %404, %406 : vector<2x32xf32>
    %cst_161 = arith.constant dense<0.000000e+00> : vector<2xf32>
    %408 = vector.multi_reduction <add>, %407, %cst_161 [1] : vector<2x32xf32> to vector<2xf32>
    %409 = vector.shape_cast %408 : vector<2xf32> to vector<2x1xf32>
    %c0_162 = arith.constant 0 : index
    %c0_163 = arith.constant 0 : index
    %410 = vector.load %arg19[%c0_162, %c0_163] : memref<1x1xf32, #tpu.memory_space<vmem>>, vector<1x1xf32>
    %411 = vector.broadcast %410 : vector<1x1xf32> to vector<2x1xf32>
    %412 = arith.addf %409, %411 : vector<2x1xf32>
    %c0_164 = arith.constant 0 : index
    %c0_165 = arith.constant 0 : index
    %413 = vector.load %arg20[%c0_164, %c0_165] : memref<2x1xf32, #tpu.memory_space<vmem>>, vector<2x1xf32>
    tpu.vector_store %arg20[%c0_164, %c0_165], %412 {strides = array<i32>} : memref<2x1xf32, #tpu.memory_space<vmem>>, vector<2x1xf32>,
    return
  }
}

</mosaic_0001>

<bundles_post_ra>
// kernel: transformer_model_forward.1
= control target key start
LH: loop header
LB: loop body
LE: loop exit
PB: predicated region body
PF: predicated region fallthrough
CT: control target
= control target key end

     0   :  { %vm106_vm0 = vcmask 1043456   ;;  %v70_v0 = vlaneseq  ;;  %v1984_v1 = vmov 0   ;;  %vm99_vm6 = vcmask 818176   ;;  %s2699_s27 = smov 64   ;;  %s1993_s29 = smov 88   ;;  %s2669_s0 = inlined_call_operand.vmem [shape: s32[16,1], index: 0, kind: input, shape index: {}]   ;;  %s2670_s2 = inlined_call_operand.vmem [shape: f32[100,32], index: 2, kind: input, shape index: {}]   ;;  %s2671_s1 = inlined_call_operand.vmem [shape: f32[1,16], index: 1, kind: input, shape index: {}]   ;;  %s2672_s3 = inlined_call_operand.vmem [shape: f32[16,32], index: 3, kind: input, shape index: {}]   ;;  %s2673_s4 = inlined_call_operand.vmem [shape: f32[1,32], index: 4, kind: input, shape index: {}]   ;;  %s2674_s5 = inlined_call_operand.vmem [shape: f32[1,32], index: 5, kind: input, shape index: {}]   ;;  %s2675_s7 = inlined_call_operand.vmem [shape: f32[2,1,96], index: 7, kind: input, shape index: {}]   ;;  %s2676_s6 = inlined_call_operand.vmem [shape: bf16[2,32,96], index: 6, kind: input, shape index: {}]   ;;  %s2677_s8 = inlined_call_operand.vmem [shape: bf16[2,32,32], index: 8, kind: input, shape index: {}]   ;;  %s2678_s9 = inlined_call_operand.vmem [shape: f32[2,1,32], index: 9, kind: input, shape index: {}]   ;;  %s2679_s10 = inlined_call_operand.vmem [shape: f32[2,1,32], index: 10, kind: input, shape index: {}]   ;;  %s2680_s11 = inlined_call_operand.vmem [shape: f32[2,1,32], index: 11, kind: input, shape index: {}]   ;;  %s2681_s13 = inlined_call_operand.vmem [shape: f32[2,1,64], index: 13, kind: input, shape index: {}]   ;;  %s2682_s12 = inlined_call_operand.vmem [shape: bf16[2,32,64], index: 12, kind: input, shape index: {}]   ;;  %s2683_s15 = inlined_call_operand.vmem [shape: f32[2,1,32], index: 15, kind: input, shape index: {}]   ;;  %s2684_s14 = inlined_call_operand.vmem [shape: bf16[2,64,32], index: 14, kind: input, shape index: {}]   ;;  %s2685_s16 = inlined_call_operand.vmem [shape: f32[2,1,32], index: 16, kind: input, shape index: {}]   ;;  %s2686_s17 = inlined_call_operand.vmem [shape: f32[2,1,32], index: 17, kind: input, shape index: {}]   ;;  %s2687_s18 = inlined_call_operand.vmem [shape: f32[1,32], index: 18, kind: input, shape index: {}]   ;;  %s2688_s19 = inlined_call_operand.<no memory space> [shape: f32[1,1], index: 19, kind: input, shape index: {}]   ;;  %s2689_s20 = inlined_call_operand.vmem [shape: f32[2,1], index: 20, kind: output, shape index: {}]  }
   0x1   :  { %2701 = sst [smem:[#allocation3_spill]] %s2669_s0  ;;  %1838 = vset.pattern.permute.xlu0 %v1984_v1  ;;  %v1985_v27 = vmov 0.0   ;;  %vm135_vm9 = vcmask 261120   ;;  %v1986_v39 = vmov 32.0   ;;  %v1801_v56 = vld [vmem:[%s2676_s6 + $0x8] sm:$0xff]  ;;  %v1800_v58 = vld [vmem:[%s2676_s6] sm:$0xff] }
   0x2   :  { %2702 = sst [smem:[#allocation4_spill]] %s2670_s2  ;;  %v71_v5 = vand.u32 127, %v70_v0  ;;  %v198_v6 = vshrl.u32 %v70_v0, 7  ;;  %1890 = vrcp.f32 %v1986_v39  ;;  %244 = vmatpush.bf16.msra.mxu1 %v1801_v56  ;;  %s1994_s30 = smov 80  }
   0x3   :  { %2703 = sst [smem:[#allocation5_spill]] %s2671_s1  ;;  %s1995_s0 = smov 72  }
   0x4   :  { %2704 = sst [smem:[#allocation6_spill]] %s2672_s3  ;;  %v199_v8 = vadd.s32 8, %v198_v6  ;;  %v200_v9 = vshra.s32 %v198_v6, 3  ;;  %v202_v10 = vshra.s32 %v71_v5, 3  ;;  %s2694_s2 = smov 48  }
   0x5   :  { %2705 = sst [smem:[#allocation7_spill]] %s2673_s4  ;;  %s1992_s4 = smov 112  }
   0x6   :  { %s2706_s23 = sld [smem:[#allocation3_spill]]  ;;  %v201_v12 = vshra.s32 %v199_v8, 3  ;;  %vm203_vm1 = vcmp.eq.s32.totalorder %v200_v9, %v202_v10  ;;  %245 = vmatpush.bf16.msra.mxu1 %v1800_v58  ;;  %s2697_s22 = smov 40  }
   0x7   :  { %s2707_s25 = sld [smem:[#allocation4_spill]]  ;;  %s2696_s1 = smov 16  }
   0x8   :  { %s2708_s21 = sld [smem:[#allocation5_spill]]  ;;  %vm204_vm2 = vcmp.eq.s32.totalorder %v201_v12, %v202_v10  ;;  %v1891_v40 = vpop.eup %1890 }
   0x9   :  { %s2713_s28 = sld [smem:[#allocation6_spill]]  ;;  %v143_v41 = vmul.f32 32.0, %v1891_v40  ;;  %vm147_vm10 = vweird.f32 %v1891_v40 }
   0xa   :  { %s2714_s24 = sld [smem:[#allocation7_spill]] }
   0xb   :  { %v144_v42 = vsub.f32 1.0, %v143_v41 }
   0xc   :  { %v68_v2 = vld [vmem:[%s2706_s23] sm:$0xff]  ;;  %v69_v14 = vld [vmem:[%s2706_s23 + $0x8] sm:$0xff]  ;;  %s2695_s23 = smov 24  }
   0xd   :  { %v96_v3 = vld [vmem:[%s2707_s25 + $0x60] sm:$0xf]  ;;  %73 = vperm.xlu0 %1838, %v68_v2   ;;  %v95_v4 = vld [vmem:[%s2707_s25 + $0x58] sm:$0xff]  ;;  %v94_v7 = vld [vmem:[%s2707_s25 + $0x50] sm:$0xff]  ;;  %v145_v43 = vmul.f32 %v1891_v40, %v144_v42 }
   0xe   :  { %1665 = vmatpush.msk.msra.mxu0 %vm106_vm0, %v96_v3  ;;  %v93_v11 = vld [vmem:[%s2707_s25 + $0x48] sm:$0xff]  ;;  %v1869_v13 = vld [vmem:[%s2708_s21] ss:$0 sm:$0xff]  ;;  %v91_v16 = vld [vmem:[%s2707_s25 + $0x38] sm:$0xff]  ;;  %s2700_s21 = smov 104  }
   0xf   :  { %v92_v15 = vld [vmem:[%s2707_s25 + $0x40] sm:$0xff]  ;;  %vm209_vm3 = vcmp.gt.f32.partialorder %v1869_v13, 0.5  ;;  %v90_v19 = vld [vmem:[%s2707_s25 + $0x30] sm:$0xff]  ;;  %v89_v20 = vld [vmem:[%s2707_s25 + $0x28] sm:$0xff]  ;;  %v146_v44 = vadd.f32 %v1891_v40, %v145_v43 }
  0x10   :  { %114 = vmatpush.msra.mxu0 %v95_v4  ;;  %vm2134_vm4 = vmand %vm203_vm1, %vm209_vm3  ;;  %v88_v21 = vld [vmem:[%s2707_s25 + $0x20] sm:$0xff]  ;;  %v87_v22 = vld [vmem:[%s2707_s25 + $0x18] sm:$0xff]  ;;  %vm256_vm1 = vcmask 64512  }
  0x11   :  { %vm2138_vm5 = vmand %vm204_vm2, %vm209_vm3  ;;  %v86_v23 = vld [vmem:[%s2707_s25 + $0x10] sm:$0xff]  ;;  %v85_v24 = vld [vmem:[%s2707_s25 + $0x8] sm:$0xff]  ;;  %v2171_v45 = vsel %vm147_vm10, %v1891_v40, %v146_v44  ;;  %vm277_vm2 = vcmask 130048  }
  0x12   :  { %115 = vmatpush.msra.mxu0 %v94_v7  ;;  %v84_v25 = vld [vmem:[%s2707_s25] sm:$0xff]  ;;  %v98_v35 = vld [vmem:[%s2713_s28 + $0x8] sm:$0xff]  ;;  %s2698_s25 = smov 56  }
  0x13   :  { %v97_v31 = vld [vmem:[%s2713_s28] sm:$0xff]  ;;  %s1990_s28 = smov 120  }
  0x14   :  { %116 = vmatpush.msra.mxu0 %v93_v11  ;;  %v1870_v13 = vld [vmem:[%s2714_s24] ss:$0 sm:$0xff]  ;;  %s2693_s24 = smov 8  }
  0x15   :  { %76 = vperm.xlu0 %1838, %v69_v14  }
  0x16   :  { %117 = vmatpush.msra.mxu0 %v92_v15 }
  0x18   :  { %118 = vmatpush.msra.mxu0 %v91_v16 }
  0x1a   :  { %119 = vmatpush.msra.mxu0 %v90_v19 }
  0x1c   :  { %120 = vmatpush.msra.mxu0 %v89_v20  ;;  %v1871_v20 = vld [vmem:[%s2674_s5] ss:$0 sm:$0xff]  ;;  %s1987_s5 = smov 96  }
  0x1e   :  { %121 = vmatpush.msra.mxu0 %v88_v21 }
  0x20   :  { %122 = vmatpush.msra.mxu0 %v87_v22 }
  0x22   :  { %123 = vmatpush.msra.mxu0 %v86_v23 }
  0x24   :  { %124 = vmatpush.msra.mxu0 %v85_v24 }
  0x26   :  { %125 = vmatpush.msra.mxu0 %v84_v25 }
  0x7f   :  { %v74_v26 = vpop.permute.xlu0 %73 }
  0x80   :  { %vm78_vm7 = vcmp.eq.s32.totalorder %v71_v5, %v74_v26  ;;  %v1872_v26 = vld [vmem:[%s2675_s7] ss:$0 sm:$0xff] }
  0x81   :  { %v1663_v28 = vsel %vm78_vm7, 1.0, %v1985_v27 }
  0x82   :  { %1666 = vmatmul.msk.f32.vlgmr.msra.gmra.mxu0 %vm99_vm6, %v1663_v28 }
  0x87   :  { %v77_v29 = vpop.permute.xlu0 %76 }
  0x88   :  { %vm79_vm8 = vcmp.eq.s32.totalorder %v71_v5, %v77_v29 }
  0x89   :  { %v1664_v30 = vsel %vm79_vm8, 1.0, %v1985_v27 }
  0x8a   :  { %1667 = vmatmul.msk.f32.gmra.mxu0 %vm99_vm6, %v1664_v30 }
  0xff   :  { %v127_v32 = vpop.f32.mrf.mxu0 }
 0x100   :  { %v128_v33 = vadd.f32 %v127_v32, %v97_v31 }
 0x102   :  { %v136_v34 = vsel %vm135_vm9, %v128_v33, 0.0 }
 0x103   :  { %137 = vadd.xlane.f32.xlu1 %v136_v34 }
 0x107   :  { %v130_v36 = vpop.f32.mrf.mxu0 }
 0x108   :  { %v131_v37 = vadd.f32 %v130_v36, %v98_v35 }
 0x10a   :  { %v139_v38 = vsel %vm135_vm9, %v131_v37, 0.0 }
 0x10b   :  { %140 = vadd.xlane.f32.xlu1 %v139_v38 }
 0x176   :  { %v138_v46 = vpop.xlane.xlu1 %137 }
 0x177   :  { %v149_v47 = vmul.f32 %v2171_v45, %v138_v46 }
 0x179   :  { %v151_v48 = vsub.f32 %v128_v33, %v149_v47  ;;  %v1988_v33 = vmov -1e+09  }
 0x17a   :  { %v2210_v34 = vsel %vm2134_vm4, 0.0, %v1988_v33  ;;  %v2216_v38 = vsel %vm2138_vm5, 0.0, %v1988_v33 }
 0x17b   :  { %v153_v49 = vmul.f32 %v151_v48, %v151_v48 }
 0x17d   :  { %v155_v50 = vsel %vm135_vm9, %v153_v49, 0.0 }
 0x17e   :  { %156 = vadd.xlane.f32.xlu2 %v155_v50  ;;  %v141_v51 = vpop.xlane.xlu1 %140 }
 0x17f   :  { %v150_v52 = vmul.f32 %v2171_v45, %v141_v51 }
 0x181   :  { %v152_v53 = vsub.f32 %v131_v37, %v150_v52 }
 0x183   :  { %v154_v54 = vmul.f32 %v152_v53, %v152_v53 }
 0x185   :  { %v158_v55 = vsel %vm135_vm9, %v154_v54, 0.0 }
 0x186   :  { %159 = vadd.xlane.f32.xlu2 %v158_v55 }
 0x1f1   :  { %v157_v57 = vpop.xlane.xlu2 %156 }
 0x1f2   :  { %v161_v59 = vmul.f32 %v157_v57, %v2171_v45 }
 0x1f4   :  { %v163_v60 = vadd.f32 1e-12, %v161_v59 }
 0x1f6   :  { %1892 = vrsqrt.f32 %v163_v60  ;;  %vm171_vm12 = vweird.f32 %v163_v60 }
 0x1f9   :  { %v160_v61 = vpop.xlane.xlu2 %159 }
 0x1fa   :  { %v162_v62 = vmul.f32 %v160_v61, %v2171_v45 }
 0x1fc   :  { %v1893_v63 = vpop.eup %1892  ;;  %v164_v0 = vadd.f32 1e-12, %v162_v62 }
 0x1fd   :  { %v166_v1 = vmul.f32 %v1893_v63, %v163_v60  ;;  %vm172_vm11 = vweird.f32 %v1893_v63 }
 0x1fe   :  { %1894 = vrsqrt.f32 %v164_v0  ;;  %vm173_vm13 = vmor %vm171_vm12, %vm172_vm11  ;;  %vm181_vm15 = vweird.f32 %v164_v0 }
 0x1ff   :  { %v167_v2 = vmul.f32 %v1893_v63, %v166_v1 }
 0x201   :  { %v168_v3 = vmul.f32 0.5, %v167_v2 }
 0x203   :  { %v169_v4 = vsub.f32 1.5, %v168_v3 }
 0x204   :  { %v1895_v5 = vpop.eup %1894 }
 0x205   :  { %v170_v6 = vmul.f32 %v1893_v63, %v169_v4  ;;  %v176_v7 = vmul.f32 %v1895_v5, %v164_v0  ;;  %vm182_vm14 = vweird.f32 %v1895_v5 }
 0x206   :  { %vm183_vm0 = vmor %vm181_vm15, %vm182_vm14 }
 0x207   :  { %v177_v8 = vmul.f32 %v1895_v5, %v176_v7  ;;  %v174_v9 = vsel %vm173_vm13, %v1893_v63, %v170_v6 }
 0x208   :  { %v185_v12 = vmul.f32 %v174_v9, %v151_v48 }
 0x209   :  { %v178_v10 = vmul.f32 0.5, %v177_v8 }
 0x20a   :  { %v190_v19 = vmul.f32 %v1870_v13, %v185_v12 }
 0x20b   :  { %v179_v11 = vsub.f32 1.5, %v178_v10 }
 0x20c   :  { %v2191_v22 = vadd.f32 %v1871_v20, %v190_v19 }
 0x20d   :  { %v180_v14 = vmul.f32 %v1895_v5, %v179_v11 }
 0x20f   :  { %v184_v15 = vsel %vm183_vm0, %v1895_v5, %v180_v14 }
 0x210   :  { %v186_v16 = vmul.f32 %v184_v15, %v152_v53 }
 0x212   :  { %v191_v21 = vmul.f32 %v1870_v13, %v186_v16 }
 0x214   :  { %v2193_v23 = vadd.f32 %v1871_v20, %v191_v21 }
 0x216   :  { %v214_v24 = vpack.c.bf16 %v2193_v23, %v2191_v22 }
 0x218   :  { %1676 = vmatmul.msk.bf16.vlgmr.msra.gmra.mxu1 %vm135_vm9, %v214_v24 }
 0x295   :  { %v247_v25 = vpop.f32.mrf.mxu1 }
 0x296   :  { %v248_v28 = vadd.f32 %v1872_v26, %v247_v25 }
 0x29d   :  { %v249_v27 = vpop.f32.mrf.mxu1 }
 0x29e   :  { %v250_v29 = vadd.f32 %v1872_v26, %v249_v27 }
 0x2a0   :  { %v2201_v30 = vpack.c.bf16 %v250_v29, %v248_v28 }
 0x2a2   :  { %254 = vrot.lane.b32.xlu0 %v2201_v30, %s1987_s5 }
 0x314   :  { %v255_v31 = vpop.permute.xlu0 %254 }
 0x315   :  { %v261_v32 = vsel %vm256_vm1, %v255_v31, 0 }
 0x316   :  { %270 = vmatpush.bf16.xpose.msra.mxu2 %v261_v32 }
 0x31d   :  { %1677 = vmatmul.msk.bf16.vlgmr.msra.gmra.mxu2 %vm256_vm1, %v2201_v30 }
 0x3a0   :  { %v272_v35 = vpop.f32.mrf.mxu2 }
 0x3a1   :  { %v273_v36 = vadd.f32 %v272_v35, %v2210_v34 }
 0x3a3   :  { %v278_v37 = vsel %vm277_vm2, %v273_v36, -inf }
 0x3a4   :  { %279 = vmax.xlane.f32.xlu1 %v278_v37 }
 0x3a8   :  { %v274_v39 = vpop.f32.mrf.mxu2 }
 0x3a9   :  { %v275_v40 = vadd.f32 %v274_v39, %v2216_v38 }
 0x3ab   :  { %v281_v41 = vsel %vm277_vm2, %v275_v40, -inf }
 0x3ac   :  { %282 = vmax.xlane.f32.xlu2 %v281_v41 }
 0x3c4   :  { %327 = vrot.lane.b32.xlu2 %v2201_v30, %s2699_s27 }
 0x3cc   :  { %347 = vrot.lane.b32.xlu2 %v2201_v30, %s1990_s28 }
 0x417   :  { %v280_v17 = vpop.xlane.xlu1 %279 }
 0x418   :  { %v284_v42 = vsub.f32 %v273_v36, %v280_v17 }
 0x41a   :  { %v286_v43 = vmul.f32 1.442695, %v284_v42 }
 0x41c   :  { %1896 = vpow2.f32 %v286_v43 }
 0x41f   :  { %v283_v18 = vpop.xlane.xlu2 %282 }
 0x420   :  { %v285_v44 = vsub.f32 %v275_v40, %v283_v18 }
 0x422   :  { %v1897_v46 = vpop.eup %1896  ;;  %v288_v47 = vmul.f32 1.442695, %v285_v44 }
 0x423   :  { %v290_v48 = vsel %vm277_vm2, %v1897_v46, 0.0 }
 0x424   :  { %1898 = vpow2.f32 %v288_v47  ;;  %291 = vadd.xlane.f32.xlu0 %v290_v48 }
 0x427   :  { %v328_v49 = vpop.permute.xlu2 %327 }
 0x428   :  { %340 = vmatpush.bf16.msra.mxu3 %v328_v49 }
 0x42a   :  { %v1899_v50 = vpop.eup %1898 }
 0x42b   :  { %v293_v51 = vsel %vm277_vm2, %v1899_v50, 0.0 }
 0x42c   :  { %294 = vadd.xlane.f32.xlu1 %v293_v51 }
 0x42f   :  { %v348_v16 = vpop.permute.xlu2 %347 }
 0x438   :  { %420 = vrot.lane.b32.xlu0 %v2201_v30, %s2698_s25  ;;  %s2730_s25 = smov 24  }
 0x440   :  { %440 = vrot.lane.b32.xlu0 %v2201_v30, %s1992_s4 }
 0x445   :  { %349 = vrot.lane.b32.xlu1 %v2201_v30, %s1993_s29 }
 0x497   :  { %v292_v52 = vpop.xlane.xlu0 %291 }
 0x498   :  { %1900 = vrcp.f32 %v292_v52  ;;  %v307_v61 = vand.u32 2147483648, %v292_v52  ;;  %vm301_vm4 = vweird.f32 %v292_v52  ;;  %v305_v62 = vand.u32 2147483647, %v292_v52 }
 0x49a   :  { %v308_v5 = vor.u32 1.1754944e-38, %v307_v61  ;;  %vm306_vm7 = vcmp.eq.f32.partialorder %v305_v62, 8.507059e+37 }
 0x49e   :  { %v1901_v53 = vpop.eup %1900 }
 0x49f   :  { %v297_v54 = vmul.f32 %v1901_v53, %v292_v52  ;;  %v295_v55 = vpop.xlane.xlu1 %294  ;;  %vm302_vm3 = vweird.f32 %v1901_v53 }
 0x4a0   :  { %1902 = vrcp.f32 %v295_v55  ;;  %vm303_vm5 = vmor %vm301_vm4, %vm302_vm3  ;;  %v322_v0 = vand.u32 2147483648, %v295_v55  ;;  %v320_v3 = vand.u32 2147483647, %v295_v55  ;;  %vm316_vm8 = vweird.f32 %v295_v55 }
 0x4a1   :  { %v298_v56 = vsub.f32 1.0, %v297_v54 }
 0x4a2   :  { %v323_v7 = vor.u32 1.1754944e-38, %v322_v0  ;;  %vm321_vm11 = vcmp.eq.f32.partialorder %v320_v3, 8.507059e+37 }
 0x4a3   :  { %v299_v57 = vmul.f32 %v1901_v53, %v298_v56 }
 0x4a5   :  { %v300_v59 = vadd.f32 %v1901_v53, %v299_v57 }
 0x4a6   :  { %v1903_v58 = vpop.eup %1902 }
 0x4a7   :  { %v312_v60 = vmul.f32 %v1903_v58, %v295_v55  ;;  %vm317_vm6 = vweird.f32 %v1903_v58  ;;  %v304_v4 = vsel %vm303_vm5, %v1901_v53, %v300_v59 }
 0x4a8   :  { %vm318_vm10 = vmor %vm316_vm8, %vm317_vm6  ;;  %v309_v8 = vsel %vm306_vm7, %v308_v5, %v304_v4 }
 0x4a9   :  { %v313_v63 = vsub.f32 1.0, %v312_v60  ;;  %v310_v11 = vmul.f32 %v1897_v46, %v309_v8 }
 0x4aa   :  { %v421_v1 = vpop.permute.xlu0 %420 }
 0x4ab   :  { %v314_v2 = vmul.f32 %v1903_v58, %v313_v63  ;;  %433 = vmatpush.bf16.msrb.mxu1 %v421_v1 }
 0x4ad   :  { %v315_v6 = vadd.f32 %v1903_v58, %v314_v2 }
 0x4af   :  { %v319_v9 = vsel %vm318_vm10, %v1903_v58, %v315_v6 }
 0x4b0   :  { %v324_v10 = vsel %vm321_vm11, %v323_v7, %v319_v9 }
 0x4b1   :  { %v325_v12 = vmul.f32 %v1899_v50, %v324_v10 }
 0x4b2   :  { %v441_v17 = vpop.permute.xlu0 %440 }
 0x4b3   :  { %v326_v13 = vpack.c.bf16 %v325_v12, %v310_v11 }
 0x4b5   :  { %1678 = vmatmul.msk.bf16.vlgmr.msra.gmra.mxu3 %vm277_vm2, %v326_v13 }
 0x4b7   :  { %v350_v14 = vpop.permute.xlu1 %349 }
 0x4b8   :  { %v355_v15 = vsel %vm256_vm1, %v350_v14, 0 }
 0x4b9   :  { %364 = vmatpush.bf16.xpose.msrb.mxu3 %v355_v15 }
 0x4c5   :  { %1679 = vmatmul.msk.bf16.vlgmr.msrb.gmra.mxu3 %vm256_vm1, %v348_v16 }
 0x538   :  { %v2235_v19 = vpop.f32.mrf.mxu3 }
 0x540   :  { %v2237_v20 = vpop.f32.mrf.mxu3 }
 0x548   :  { %v366_v21 = vpop.f32.mrf.mxu3 }
 0x549   :  { %v367_v24 = vadd.f32 %v366_v21, %v2210_v34 }
 0x54b   :  { %v371_v25 = vsel %vm277_vm2, %v367_v24, -inf }
 0x54c   :  { %372 = vmax.xlane.f32.xlu2 %v371_v25 }
 0x550   :  { %v368_v26 = vpop.f32.mrf.mxu3 }
 0x551   :  { %v369_v27 = vadd.f32 %v368_v26, %v2216_v38 }
 0x553   :  { %v374_v28 = vsel %vm277_vm2, %v369_v27, -inf }
 0x554   :  { %375 = vmax.xlane.f32.xlu1 %v374_v28 }
 0x564   :  { %442 = vrot.lane.b32.xlu2 %v2201_v30, %s1994_s30 }
 0x56d   :  { %535 = vrot.lane.b32.xlu1 %v2201_v30, %s1995_s0 }
 0x5bf   :  { %v373_v29 = vpop.xlane.xlu2 %372 }
 0x5c0   :  { %v377_v31 = vsub.f32 %v367_v24, %v373_v29 }
 0x5c2   :  { %v379_v32 = vmul.f32 1.442695, %v377_v31 }
 0x5c4   :  { %1904 = vpow2.f32 %v379_v32 }
 0x5c7   :  { %v376_v33 = vpop.xlane.xlu1 %375  ;;  %v443_v35 = vpop.permute.xlu2 %442 }
 0x5c8   :  { %v378_v36 = vsub.f32 %v369_v27, %v376_v33  ;;  %v448_v37 = vsel %vm256_vm1, %v443_v35, 0 }
 0x5c9   :  { %457 = vmatpush.bf16.xpose.msrb.mxu2 %v448_v37 }
 0x5ca   :  { %v1905_v39 = vpop.eup %1904  ;;  %v381_v40 = vmul.f32 1.442695, %v378_v36 }
 0x5cb   :  { %v383_v41 = vsel %vm277_vm2, %v1905_v39, 0.0 }
 0x5cc   :  { %1906 = vpow2.f32 %v381_v40  ;;  %384 = vadd.xlane.f32.xlu0 %v383_v41 }
 0x5d0   :  { %1681 = vmatmul.msk.bf16.vlgmr.msrb.gmra.mxu2 %vm256_vm1, %v441_v17 }
 0x5d2   :  { %v1907_v42 = vpop.eup %1906 }
 0x5d3   :  { %v386_v43 = vsel %vm277_vm2, %v1907_v42, 0.0 }
 0x5d4   :  { %387 = vadd.xlane.f32.xlu0 %v386_v43 }
 0x5df   :  { %v536_v18 = vpop.permute.xlu1 %535 }
 0x5e0   :  { %v541_v44 = vsel %vm256_vm1, %v536_v18, 0 }
 0x5e1   :  { %550 = vmatpush.bf16.xpose.msra.mxu1 %v541_v44 }
 0x5e8   :  { %533 = vrot.lane.b32.xlu0 %v2201_v30, %s2700_s21 }
 0x63f   :  { %v385_v46 = vpop.xlane.xlu0 %384 }
 0x640   :  { %1908 = vrcp.f32 %v385_v46  ;;  %v400_v55 = vand.u32 2147483648, %v385_v46  ;;  %vm394_vm13 = vweird.f32 %v385_v46  ;;  %v398_v56 = vand.u32 2147483647, %v385_v46 }
 0x642   :  { %v401_v0 = vor.u32 1.1754944e-38, %v400_v55  ;;  %vm399_vm0 = vcmp.eq.f32.partialorder %v398_v56, 8.507059e+37 }
 0x646   :  { %v1909_v47 = vpop.eup %1908 }
 0x647   :  { %v390_v48 = vmul.f32 %v1909_v47, %v385_v46  ;;  %v388_v49 = vpop.xlane.xlu0 %387  ;;  %vm395_vm12 = vweird.f32 %v1909_v47 }
 0x648   :  { %1910 = vrcp.f32 %v388_v49  ;;  %vm2254_vm14 = vmor %vm394_vm13, %vm395_vm12  ;;  %v415_v59 = vand.u32 2147483648, %v388_v49  ;;  %v413_v62 = vand.u32 2147483647, %v388_v49  ;;  %vm409_vm3 = vweird.f32 %v388_v49 }
 0x649   :  { %v391_v50 = vsub.f32 1.0, %v390_v48 }
 0x64a   :  { %v416_v3 = vor.u32 1.1754944e-38, %v415_v59  ;;  %vm414_vm5 = vcmp.eq.f32.partialorder %v413_v62, 8.507059e+37 }
 0x64b   :  { %v392_v51 = vmul.f32 %v1909_v47, %v391_v50 }
 0x64d   :  { %v393_v53 = vadd.f32 %v1909_v47, %v392_v51 }
 0x64e   :  { %v1911_v52 = vpop.eup %1910 }
 0x64f   :  { %v405_v54 = vmul.f32 %v1911_v52, %v388_v49  ;;  %v397_v60 = vsel %vm2254_vm14, %v1909_v47, %v393_v53  ;;  %vm410_vm15 = vweird.f32 %v1911_v52 }
 0x650   :  { %vm411_vm4 = vmor %vm409_vm3, %vm410_vm15  ;;  %v402_v5 = vsel %vm399_vm0, %v401_v0, %v397_v60 }
 0x651   :  { %v406_v57 = vsub.f32 1.0, %v405_v54  ;;  %v403_v8 = vmul.f32 %v1905_v39, %v402_v5 }
 0x653   :  { %v407_v61 = vmul.f32 %v1911_v52, %v406_v57  ;;  %v459_v63 = vpop.f32.mrf.mxu2 }
 0x654   :  { %v460_v1 = vadd.f32 %v459_v63, %v2210_v34 }
 0x655   :  { %v408_v2 = vadd.f32 %v1911_v52, %v407_v61 }
 0x656   :  { %v464_v4 = vsel %vm277_vm2, %v460_v1, -inf }
 0x657   :  { %v412_v6 = vsel %vm411_vm4, %v1911_v52, %v408_v2  ;;  %465 = vmax.xlane.f32.xlu0 %v464_v4 }
 0x658   :  { %v417_v7 = vsel %vm414_vm5, %v416_v3, %v412_v6 }
 0x659   :  { %v418_v9 = vmul.f32 %v1907_v42, %v417_v7 }
 0x65a   :  { %v534_v14 = vpop.permute.xlu0 %533 }
 0x65b   :  { %v461_v10 = vpop.f32.mrf.mxu2  ;;  %v419_v11 = vpack.c.bf16 %v418_v9, %v403_v8 }
 0x65c   :  { %v462_v12 = vadd.f32 %v461_v10, %v2216_v38 }
 0x65d   :  { %1680 = vmatmul.msk.bf16.vlgmr.msrb.gmra.mxu1 %vm277_vm2, %v419_v11 }
 0x65e   :  { %v467_v13 = vsel %vm277_vm2, %v462_v12, -inf }
 0x65f   :  { %468 = vmax.xlane.f32.xlu2 %v467_v13 }
 0x66d   :  { %1683 = vmatmul.msk.bf16.vlgmr.msra.gmra.mxu1 %vm256_vm1, %v534_v14 }
 0x6ca   :  { %v466_v15 = vpop.xlane.xlu0 %465 }
 0x6cb   :  { %v470_v16 = vsub.f32 %v460_v1, %v466_v15 }
 0x6cd   :  { %v472_v21 = vmul.f32 1.442695, %v470_v16 }
 0x6cf   :  { %1912 = vpow2.f32 %v472_v21 }
 0x6d2   :  { %v469_v27 = vpop.xlane.xlu2 %468 }
 0x6d3   :  { %v471_v31 = vsub.f32 %v462_v12, %v469_v27 }
 0x6d5   :  { %v2266_v24 = vpop.eup %1912  ;;  %v474_v32 = vmul.f32 1.442695, %v471_v31 }
 0x6d6   :  { %v476_v25 = vsel %vm277_vm2, %v2266_v24, 0.0 }
 0x6d7   :  { %477 = vadd.xlane.f32.xlu2 %v476_v25  ;;  %1914 = vpow2.f32 %v474_v32 }
 0x6da   :  { %v2270_v26 = vpop.f32.mrf.mxu1 }
 0x6dd   :  { %v1915_v37 = vpop.eup %1914 }
 0x6de   :  { %v479_v41 = vsel %vm277_vm2, %v1915_v37, 0.0 }
 0x6e2   :  { %v2272_v28 = vpop.f32.mrf.mxu1 }
 0x6e3   :  { %v1839_v29 = vpack.i.bf16 %v2272_v28, %v2270_v26 }
 0x6ea   :  { %v552_v33 = vpop.f32.mrf.mxu1 }
 0x6eb   :  { %v553_v35 = vadd.f32 %v552_v33, %v2210_v34 }
 0x6ed   :  { %v557_v36 = vsel %vm277_vm2, %v553_v35, -inf }
 0x6ee   :  { %558 = vmax.xlane.f32.xlu1 %v557_v36 }
 0x6f2   :  { %v554_v39 = vpop.f32.mrf.mxu1 }
 0x6f3   :  { %v555_v40 = vadd.f32 %v554_v39, %v2216_v38 }
 0x6f5   :  { %v560_v17 = vsel %vm277_vm2, %v555_v40, -inf }
 0x6f6   :  { %480 = vadd.xlane.f32.xlu1 %v479_v41  ;;  %561 = vmax.xlane.f32.xlu0 %v560_v17 }
 0x70f   :  { %513 = vrot.lane.b32.xlu1 %v2201_v30, %s2694_s2 }
 0x74a   :  { %v478_v42 = vpop.xlane.xlu2 %477 }
 0x74b   :  { %1916 = vrcp.f32 %v478_v42  ;;  %v493_v2 = vand.u32 2147483648, %v478_v42  ;;  %vm487_vm11 = vweird.f32 %v478_v42  ;;  %v491_v3 = vand.u32 2147483647, %v478_v42 }
 0x74d   :  { %v494_v7 = vor.u32 1.1754944e-38, %v493_v2  ;;  %vm492_vm14 = vcmp.eq.f32.partialorder %v491_v3, 8.507059e+37 }
 0x751   :  { %v1917_v46 = vpop.eup %1916 }
 0x752   :  { %v483_v49 = vmul.f32 %v1917_v46, %v478_v42  ;;  %vm488_vm7 = vweird.f32 %v1917_v46 }
 0x753   :  { %vm489_vm12 = vmor %vm487_vm11, %vm488_vm7 }
 0x754   :  { %v484_v54 = vsub.f32 1.0, %v483_v49 }
 0x756   :  { %v485_v57 = vmul.f32 %v1917_v46, %v484_v54 }
 0x758   :  { %v486_v63 = vadd.f32 %v1917_v46, %v485_v57 }
 0x75a   :  { %v490_v6 = vsel %vm489_vm12, %v1917_v46, %v486_v63 }
 0x75b   :  { %v495_v9 = vsel %vm492_vm14, %v494_v7, %v490_v6 }
 0x75c   :  { %v496_v11 = vmul.f32 %v2266_v24, %v495_v9 }
 0x761   :  { %v559_v43 = vpop.xlane.xlu1 %558 }
 0x762   :  { %v563_v18 = vsub.f32 %v553_v35, %v559_v43 }
 0x764   :  { %v565_v44 = vmul.f32 1.442695, %v563_v18 }
 0x766   :  { %1918 = vpow2.f32 %v565_v44 }
 0x769   :  { %v481_v47 = vpop.xlane.xlu1 %480  ;;  %v562_v48 = vpop.xlane.xlu0 %561 }
 0x76a   :  { %1920 = vrcp.f32 %v481_v47  ;;  %v564_v50 = vsub.f32 %v555_v40, %v562_v48  ;;  %v508_v61 = vand.u32 2147483648, %v481_v47  ;;  %vm502_vm8 = vweird.f32 %v481_v47 }
 0x76b   :  { %v506_v1 = vand.u32 2147483647, %v481_v47 }
 0x76c   :  { %v2283_v51 = vpop.eup %1918  ;;  %v567_v52 = vmul.f32 1.442695, %v564_v50  ;;  %v509_v5 = vor.u32 1.1754944e-38, %v508_v61  ;;  %v1803_v50 = vld [vmem:[%s2677_s8 + $0x8] sm:$0xff] }
 0x76d   :  { %v569_v53 = vsel %vm277_vm2, %v2283_v51, 0.0  ;;  %vm507_vm13 = vcmp.eq.f32.partialorder %v506_v1, 8.507059e+37  ;;  %687 = vmatpush.bf16.msrb.mxu0 %v1803_v50 }
 0x76e   :  { %570 = vadd.xlane.f32.xlu0 %v569_v53  ;;  %1922 = vpow2.f32 %v567_v52 }
 0x770   :  { %v1921_v55 = vpop.eup %1920 }
 0x771   :  { %v498_v56 = vmul.f32 %v1921_v55, %v481_v47  ;;  %vm503_vm6 = vweird.f32 %v1921_v55 }
 0x772   :  { %vm504_vm10 = vmor %vm502_vm8, %vm503_vm6 }
 0x773   :  { %v499_v58 = vsub.f32 1.0, %v498_v56 }
 0x774   :  { %v2287_v59 = vpop.eup %1922 }
 0x775   :  { %v500_v60 = vmul.f32 %v1921_v55, %v499_v58  ;;  %v572_v62 = vsel %vm277_vm2, %v2287_v59, 0.0 }
 0x776   :  { %573 = vadd.xlane.f32.xlu2 %v572_v62 }
 0x777   :  { %v501_v0 = vadd.f32 %v1921_v55, %v500_v60 }
 0x779   :  { %v505_v4 = vsel %vm504_vm10, %v1921_v55, %v501_v0  ;;  %vm654_vm10 = vcmask 195584  }
 0x77a   :  { %v510_v8 = vsel %vm507_vm13, %v509_v5, %v505_v4 }
 0x77b   :  { %v511_v10 = vmul.f32 %v1915_v37, %v510_v8 }
 0x77d   :  { %v512_v13 = vpack.c.bf16 %v511_v10, %v496_v11 }
 0x781   :  { %v514_v12 = vpop.permute.xlu1 %513 }
 0x782   :  { %526 = vmatpush.bf16.msra.mxu3 %v514_v12  ;;  %606 = vrot.lane.b32.xlu0 %v2201_v30, %s2697_s22 }
 0x785   :  { %1682 = vmatmul.msk.bf16.vlgmr.msra.gmra.mxu3 %vm277_vm2, %v512_v13 }
 0x78e   :  { %1840 = vrot.lane.b32.xlu2 %v1839_v29, %s2693_s24 }
 0x7e1   :  { %v571_v14 = vpop.xlane.xlu0 %570 }
 0x7e2   :  { %1924 = vrcp.f32 %v571_v14  ;;  %v586_v32 = vand.u32 2147483648, %v571_v14  ;;  %vm580_vm0 = vweird.f32 %v571_v14  ;;  %v584_v33 = vand.u32 2147483647, %v571_v14 }
 0x7e4   :  { %v587_v39 = vor.u32 1.1754944e-38, %v586_v32  ;;  %vm585_vm5 = vcmp.eq.f32.partialorder %v584_v33, 8.507059e+37 }
 0x7e8   :  { %v1925_v15 = vpop.eup %1924 }
 0x7e9   :  { %v576_v16 = vmul.f32 %v1925_v15, %v571_v14  ;;  %v574_v21 = vpop.xlane.xlu2 %573  ;;  %vm581_vm15 = vweird.f32 %v1925_v15 }
 0x7ea   :  { %1926 = vrcp.f32 %v574_v21  ;;  %vm582_vm3 = vmor %vm580_vm0, %vm581_vm15  ;;  %v601_v26 = vand.u32 2147483648, %v574_v21  ;;  %v599_v37 = vand.u32 2147483647, %v574_v21  ;;  %vm595_vm6 = vweird.f32 %v574_v21 }
 0x7eb   :  { %v577_v24 = vsub.f32 1.0, %v576_v16 }
 0x7ec   :  { %v602_v17 = vor.u32 1.1754944e-38, %v601_v26  ;;  %vm600_vm8 = vcmp.eq.f32.partialorder %v599_v37, 8.507059e+37 }
 0x7ed   :  { %v578_v25 = vmul.f32 %v1925_v15, %v577_v24 }
 0x7ef   :  { %v579_v31 = vadd.f32 %v1925_v15, %v578_v25 }
 0x7f0   :  { %v1927_v27 = vpop.eup %1926 }
 0x7f1   :  { %v591_v30 = vmul.f32 %v1927_v27, %v574_v21  ;;  %v583_v28 = vsel %vm582_vm3, %v1925_v15, %v579_v31  ;;  %vm596_vm4 = vweird.f32 %v1927_v27  ;;  %v1841_v55 = vpop.permute.xlu2 %1840  ;;  %vm846_vm3 = vcmask 523264  }
 0x7f2   :  { %v588_v41 = vsel %vm585_vm5, %v587_v39, %v583_v28  ;;  %vm597_vm7 = vmor %vm595_vm6, %vm596_vm4  ;;  %v1843_v57 = vunpack.i.h.bf16 %v1841_v55  ;;  %v1842_v58 = vunpack.i.l.bf16 %v1841_v55 }
 0x7f3   :  { %v592_v35 = vsub.f32 1.0, %v591_v30  ;;  %v589_v18 = vmul.f32 %v2283_v51, %v588_v41  ;;  %v1802_v51 = vld [vmem:[%s2677_s8] sm:$0xff] }
 0x7f4   :  { %v607_v36 = vpop.permute.xlu0 %606  ;;  %688 = vmatpush.bf16.msrb.mxu0 %v1802_v51  ;;  %v651_v62 = vsel %vm256_vm1, %v2237_v20, %v1843_v57  ;;  %v650_v63 = vsel %vm256_vm1, %v2235_v19, %v1842_v58  ;;  %v1873_v20 = vld [vmem:[%s2678_s9] ss:$0 sm:$0xff] }
 0x7f5   :  { %619 = vmatpush.bf16.msra.mxu2 %v607_v36  ;;  %v593_v29 = vmul.f32 %v1927_v27, %v592_v35  ;;  %v1804_v36 = vld [vmem:[%s2682_s12] sm:$0xff] }
 0x7f7   :  { %v594_v40 = vadd.f32 %v1927_v27, %v593_v29 }
 0x7f9   :  { %v598_v42 = vsel %vm597_vm7, %v1927_v27, %v594_v40 }
 0x7fa   :  { %v603_v43 = vsel %vm600_vm8, %v602_v17, %v598_v42 }
 0x7fb   :  { %v604_v44 = vmul.f32 %v2287_v59, %v603_v43 }
 0x7fd   :  { %v605_v46 = vpack.c.bf16 %v604_v44, %v589_v18 }
 0x7ff   :  { %1684 = vmatmul.msk.bf16.vlgmr.msra.gmra.mxu2 %vm277_vm2, %v605_v46 }
 0x808   :  { %v528_v47 = vpop.f32.mrf.mxu3 }
 0x810   :  { %v530_v48 = vpop.f32.mrf.mxu3 }
 0x811   :  { %v1844_v49 = vpack.i.bf16 %v530_v48, %v528_v47 }
 0x813   :  { %1845 = vrot.lane.b32.xlu0 %v1844_v49, %s2696_s1  ;;  %v1874_v49 = vld [vmem:[%s2679_s10] ss:$0 sm:$0xff] }
 0x882   :  { %v621_v52 = vpop.f32.mrf.mxu2 }
 0x885   :  { %v1846_v56 = vpop.permute.xlu0 %1845 }
 0x886   :  { %v1848_v59 = vunpack.i.h.bf16 %v1846_v56  ;;  %v1847_v60 = vunpack.i.l.bf16 %v1846_v56 }
 0x888   :  { %v653_v2 = vsel %vm277_vm2, %v651_v62, %v1848_v59  ;;  %v652_v3 = vsel %vm277_vm2, %v650_v63, %v1847_v60  ;;  %v1809_v60 = vld [vmem:[%s2684_s14 + $0x18] sm:$0xff]  ;;  %v1807_v62 = vld [vmem:[%s2684_s14 + $0x8] sm:$0xff]  ;;  %v1806_v63 = vld [vmem:[%s2684_s14] sm:$0xff] }
 0x889   :  { %854 = vmatpush.bf16.msrb.mxu1 %v1809_v60 }
 0x88a   :  { %v623_v53 = vpop.f32.mrf.mxu2 }
 0x88b   :  { %v1849_v54 = vpack.i.bf16 %v623_v53, %v621_v52 }
 0x88d   :  { %1850 = vrot.lane.b32.xlu1 %v1849_v54, %s2695_s23  ;;  %v1875_v54 = vld [vmem:[%s2680_s11] ss:$0 sm:$0xff] }
 0x8ff   :  { %v1851_v61 = vpop.permute.xlu1 %1850 }
 0x900   :  { %v1853_v0 = vunpack.i.h.bf16 %v1851_v61  ;;  %v1852_v1 = vunpack.i.l.bf16 %v1851_v61  ;;  %v1808_v61 = vld [vmem:[%s2684_s14 + $0x10] sm:$0xff] }
 0x901   :  { %855 = vmatpush.bf16.msrb.mxu1 %v1808_v61 }
 0x902   :  { %v655_v4 = vsel %vm654_vm10, %v652_v3, %v1852_v1  ;;  %v656_v5 = vsel %vm654_vm10, %v653_v2, %v1853_v0  ;;  %v1876_v0 = vld [vmem:[%s2681_s13] ss:$0 sm:$0xff] }
 0x903   :  { %v657_v6 = vpack.c.bf16 %v656_v5, %v655_v4 }
 0x905   :  { %1693 = vmatmul.msk.bf16.vlgmr.msrb.gmra.mxu0 %vm135_vm9, %v657_v6  ;;  %856 = vmatpush.bf16.msrb.mxu1 %v1807_v62 }
 0x909   :  { %857 = vmatpush.bf16.msrb.mxu1 %v1806_v63 }
 0x982   :  { %v690_v7 = vpop.f32.mrf.mxu0 }
 0x983   :  { %v691_v8 = vadd.f32 %v1873_v20, %v690_v7 }
 0x985   :  { %v695_v19 = vadd.f32 %v691_v8, %v2191_v22 }
 0x987   :  { %v699_v9 = vsel %vm135_vm9, %v695_v19, 0.0 }
 0x988   :  { %700 = vadd.xlane.f32.xlu2 %v699_v9 }
 0x98a   :  { %v692_v10 = vpop.f32.mrf.mxu0 }
 0x98b   :  { %v693_v11 = vadd.f32 %v1873_v20, %v692_v10 }
 0x98d   :  { %v696_v12 = vadd.f32 %v693_v11, %v2193_v23  ;;  %v1805_v23 = vld [vmem:[%s2682_s12 + $0x8] sm:$0xff] }
 0x98e   :  { %783 = vmatpush.bf16.msrb.mxu3 %v1805_v23 }
 0x98f   :  { %v702_v13 = vsel %vm135_vm9, %v696_v12, 0.0 }
 0x990   :  { %703 = vadd.xlane.f32.xlu0 %v702_v13 }
 0x992   :  { %784 = vmatpush.bf16.msrb.mxu3 %v1804_v36 }
 0x9fb   :  { %v701_v14 = vpop.xlane.xlu2 %700 }
 0x9fc   :  { %v705_v15 = vmul.f32 %v701_v14, %v2171_v45 }
 0x9fe   :  { %v707_v16 = vsub.f32 %v695_v19, %v705_v15 }
 0xa00   :  { %v709_v21 = vmul.f32 %v707_v16, %v707_v16 }
 0xa02   :  { %v711_v24 = vsel %vm135_vm9, %v709_v21, 0.0 }
 0xa03   :  { %v704_v25 = vpop.xlane.xlu0 %703  ;;  %712 = vadd.xlane.f32.xlu1 %v711_v24 }
 0xa04   :  { %v706_v22 = vmul.f32 %v704_v25, %v2171_v45 }
 0xa06   :  { %v708_v27 = vsub.f32 %v696_v12, %v706_v22 }
 0xa08   :  { %v710_v31 = vmul.f32 %v708_v27, %v708_v27 }
 0xa0a   :  { %v714_v30 = vsel %vm135_vm9, %v710_v31, 0.0  ;;  %v1877_v31 = vld [vmem:[%s2683_s15] ss:$0 sm:$0xff] }
 0xa0b   :  { %715 = vadd.xlane.f32.xlu2 %v714_v30 }
 0xa76   :  { %v713_v32 = vpop.xlane.xlu1 %712 }
 0xa77   :  { %v717_v33 = vmul.f32 %v713_v32, %v2171_v45 }
 0xa79   :  { %v719_v35 = vadd.f32 1e-12, %v717_v33 }
 0xa7b   :  { %1928 = vrsqrt.f32 %v719_v35  ;;  %vm727_vm12 = vweird.f32 %v719_v35 }
 0xa7e   :  { %v716_v26 = vpop.xlane.xlu2 %715 }
 0xa7f   :  { %v718_v28 = vmul.f32 %v716_v26, %v2171_v45 }
 0xa81   :  { %v1929_v29 = vpop.eup %1928  ;;  %v720_v37 = vadd.f32 1e-12, %v718_v28 }
 0xa82   :  { %v722_v39 = vmul.f32 %v1929_v29, %v719_v35  ;;  %vm728_vm11 = vweird.f32 %v1929_v29 }
 0xa83   :  { %1930 = vrsqrt.f32 %v720_v37  ;;  %vm729_vm13 = vmor %vm727_vm12, %vm728_vm11  ;;  %vm737_vm15 = vweird.f32 %v720_v37 }
 0xa84   :  { %v723_v40 = vmul.f32 %v1929_v29, %v722_v39 }
 0xa86   :  { %v724_v41 = vmul.f32 0.5, %v723_v40 }
 0xa88   :  { %v725_v17 = vsub.f32 1.5, %v724_v41 }
 0xa89   :  { %v1931_v42 = vpop.eup %1930 }
 0xa8a   :  { %v726_v43 = vmul.f32 %v1929_v29, %v725_v17  ;;  %v732_v18 = vmul.f32 %v1931_v42, %v720_v37  ;;  %vm738_vm14 = vweird.f32 %v1931_v42 }
 0xa8b   :  { %vm739_vm0 = vmor %vm737_vm15, %vm738_vm14 }
 0xa8c   :  { %v733_v44 = vmul.f32 %v1931_v42, %v732_v18  ;;  %v730_v46 = vsel %vm729_vm13, %v1929_v29, %v726_v43 }
 0xa8d   :  { %v741_v50 = vmul.f32 %v730_v46, %v707_v16  ;;  %v1811_v46 = vld [vmem:[%s2676_s6 + $0x18] sm:$0xff] }
 0xa8e   :  { %v734_v47 = vmul.f32 0.5, %v733_v44  ;;  %954 = vmatpush.bf16.msrb.mxu2 %v1811_v46 }
 0xa8f   :  { %v746_v51 = vmul.f32 %v1874_v49, %v741_v50  ;;  %v1810_v50 = vld [vmem:[%s2676_s6 + $0x10] sm:$0xff] }
 0xa90   :  { %v735_v48 = vsub.f32 1.5, %v734_v47 }
 0xa91   :  { %v751_v57 = vadd.f32 %v1875_v54, %v746_v51 }
 0xa92   :  { %v736_v52 = vmul.f32 %v1931_v42, %v735_v48  ;;  %955 = vmatpush.bf16.msrb.mxu2 %v1810_v50 }
 0xa94   :  { %v740_v53 = vsel %vm739_vm0, %v1931_v42, %v736_v52 }
 0xa95   :  { %v742_v55 = vmul.f32 %v740_v53, %v708_v27 }
 0xa97   :  { %v747_v56 = vmul.f32 %v1874_v49, %v742_v55 }
 0xa99   :  { %v752_v58 = vadd.f32 %v1875_v54, %v747_v56 }
 0xa9b   :  { %v753_v59 = vpack.c.bf16 %v752_v58, %v751_v57 }
 0xa9d   :  { %1702 = vmatmul.msk.bf16.vlgmr.msrb.gmra.mxu3 %vm135_vm9, %v753_v59 }
 0xb20   :  { %v786_v1 = vpop.f32.mrf.mxu3 }
 0xb21   :  { %v787_v2 = vadd.f32 %v1876_v0, %v786_v1 }
 0xb23   :  { %v793_v3 = vmul.f32 0.044715, %v787_v2  ;;  %v791_v16 = vmul.f32 0.5, %v787_v2 }
 0xb25   :  { %v795_v4 = vmul.f32 %v793_v3, %v787_v2 }
 0xb27   :  { %v797_v5 = vmul.f32 %v795_v4, %v787_v2 }
 0xb28   :  { %v788_v6 = vpop.f32.mrf.mxu3 }
 0xb29   :  { %v799_v20 = vadd.f32 %v797_v5, %v787_v2  ;;  %v789_v7 = vadd.f32 %v1876_v0, %v788_v6  ;;  %v1878_v2 = vld [vmem:[%s2685_s16] ss:$0 sm:$0xff] }
 0xb2a   :  { %v1879_v6 = vld [vmem:[%s2686_s17] ss:$0 sm:$0xff] }
 0xb2b   :  { %v794_v8 = vmul.f32 0.044715, %v789_v7  ;;  %v801_v19 = vmul.f32 0.7978846, %v799_v20  ;;  %v792_v21 = vmul.f32 0.5, %v789_v7 }
 0xb2d   :  { %v796_v9 = vmul.f32 %v794_v8, %v789_v7  ;;  %1932 = vtanh.f32 %v801_v19 }
 0xb2f   :  { %v798_v10 = vmul.f32 %v796_v9, %v789_v7 }
 0xb31   :  { %v800_v11 = vadd.f32 %v798_v10, %v789_v7 }
 0xb33   :  { %v802_v12 = vmul.f32 0.7978846, %v800_v11  ;;  %v1933_v13 = vpop.eup %1932 }
 0xb34   :  { %v805_v14 = vadd.f32 1.0, %v1933_v13 }
 0xb35   :  { %1934 = vtanh.f32 %v802_v12  ;;  %v1880_v12 = vld [vmem:[%s2675_s7 + $0x1] ss:$0 sm:$0xff]  ;;  %s2717_s7 = smov 104  }
 0xb36   :  { %v807_v25 = vmul.f32 %v805_v14, %v791_v16 }
 0xb3b   :  { %v1935_v15 = vpop.eup %1934 }
 0xb3c   :  { %v806_v24 = vadd.f32 1.0, %v1935_v15 }
 0xb3e   :  { %v808_v22 = vmul.f32 %v806_v24, %v792_v21 }
 0xb40   :  { %v809_v27 = vpack.c.bf16 %v808_v22, %v807_v25 }
 0xb42   :  { %1719 = vmatmul.msk.bf16.vlgmr.msrb.gmra.mxu1 %vm846_vm3, %v809_v27 }
 0xbbf   :  { %v859_v30 = vpop.f32.mrf.mxu1 }
 0xbc0   :  { %v860_v23 = vadd.f32 %v1877_v31, %v859_v30 }
 0xbc2   :  { %v864_v32 = vadd.f32 %v860_v23, %v751_v57 }
 0xbc4   :  { %v868_v33 = vsel %vm135_vm9, %v864_v32, 0.0 }
 0xbc5   :  { %869 = vadd.xlane.f32.xlu0 %v868_v33 }
 0xbc7   :  { %v861_v35 = vpop.f32.mrf.mxu1 }
 0xbc8   :  { %v862_v36 = vadd.f32 %v1877_v31, %v861_v35 }
 0xbca   :  { %v865_v26 = vadd.f32 %v862_v36, %v752_v58 }
 0xbcc   :  { %v871_v28 = vsel %vm135_vm9, %v865_v26, 0.0 }
 0xbcd   :  { %872 = vadd.xlane.f32.xlu1 %v871_v28 }
 0xc38   :  { %v870_v29 = vpop.xlane.xlu0 %869 }
 0xc39   :  { %v874_v37 = vmul.f32 %v870_v29, %v2171_v45 }
 0xc3b   :  { %v876_v39 = vsub.f32 %v864_v32, %v874_v37 }
 0xc3d   :  { %v878_v40 = vmul.f32 %v876_v39, %v876_v39 }
 0xc3f   :  { %v880_v41 = vsel %vm135_vm9, %v878_v40, 0.0 }
 0xc40   :  { %v873_v17 = vpop.xlane.xlu1 %872  ;;  %881 = vadd.xlane.f32.xlu2 %v880_v41 }
 0xc41   :  { %v875_v42 = vmul.f32 %v873_v17, %v2171_v45 }
 0xc43   :  { %v877_v43 = vsub.f32 %v865_v26, %v875_v42 }
 0xc45   :  { %v879_v18 = vmul.f32 %v877_v43, %v877_v43 }
 0xc47   :  { %v883_v44 = vsel %vm135_vm9, %v879_v18, 0.0 }
 0xc48   :  { %884 = vadd.xlane.f32.xlu0 %v883_v44 }
 0xcb3   :  { %v882_v47 = vpop.xlane.xlu2 %881 }
 0xcb4   :  { %v886_v48 = vmul.f32 %v882_v47, %v2171_v45 }
 0xcb6   :  { %v888_v49 = vadd.f32 1e-12, %v886_v48 }
 0xcb8   :  { %1936 = vrsqrt.f32 %v888_v49  ;;  %vm896_vm5 = vweird.f32 %v888_v49 }
 0xcbb   :  { %v885_v52 = vpop.xlane.xlu0 %884 }
 0xcbc   :  { %v887_v53 = vmul.f32 %v885_v52, %v2171_v45 }
 0xcbe   :  { %v1937_v54 = vpop.eup %1936  ;;  %v889_v51 = vadd.f32 1e-12, %v887_v53 }
 0xcbf   :  { %v891_v55 = vmul.f32 %v1937_v54, %v888_v49  ;;  %vm897_vm4 = vweird.f32 %v1937_v54 }
 0xcc0   :  { %1938 = vrsqrt.f32 %v889_v51  ;;  %vm898_vm6 = vmor %vm896_vm5, %vm897_vm4  ;;  %vm906_vm8 = vweird.f32 %v889_v51 }
 0xcc1   :  { %v892_v56 = vmul.f32 %v1937_v54, %v891_v55 }
 0xcc3   :  { %v893_v57 = vmul.f32 0.5, %v892_v56 }
 0xcc5   :  { %v894_v58 = vsub.f32 1.5, %v893_v57 }
 0xcc6   :  { %v1939_v59 = vpop.eup %1938 }
 0xcc7   :  { %v895_v60 = vmul.f32 %v1937_v54, %v894_v58  ;;  %v901_v61 = vmul.f32 %v1939_v59, %v889_v51  ;;  %vm907_vm7 = vweird.f32 %v1939_v59 }
 0xcc8   :  { %vm908_vm11 = vmor %vm906_vm8, %vm907_vm7 }
 0xcc9   :  { %v902_v62 = vmul.f32 %v1939_v59, %v901_v61  ;;  %v899_v63 = vsel %vm898_vm6, %v1937_v54, %v895_v60 }
 0xcca   :  { %v910_v3 = vmul.f32 %v899_v63, %v876_v39 }
 0xccb   :  { %v903_v0 = vmul.f32 0.5, %v902_v62 }
 0xccc   :  { %v915_v20 = vmul.f32 %v1878_v2, %v910_v3 }
 0xccd   :  { %v904_v1 = vsub.f32 1.5, %v903_v0 }
 0xcce   :  { %v2384_v19 = vadd.f32 %v1879_v6, %v915_v20 }
 0xccf   :  { %v905_v4 = vmul.f32 %v1939_v59, %v904_v1 }
 0xcd1   :  { %v909_v5 = vsel %vm908_vm11, %v1939_v59, %v905_v4 }
 0xcd2   :  { %v911_v7 = vmul.f32 %v909_v5, %v877_v43 }
 0xcd4   :  { %v916_v8 = vmul.f32 %v1878_v2, %v911_v7 }
 0xcd6   :  { %v2386_v9 = vadd.f32 %v1879_v6, %v916_v8 }
 0xcd8   :  { %v922_v10 = vpack.c.bf16 %v2386_v9, %v2384_v19 }
 0xcda   :  { %1733 = vmatmul.msk.bf16.vlgmr.msrb.gmra.mxu2 %vm135_vm9, %v922_v10 }
 0xd5d   :  { %v957_v11 = vpop.f32.mrf.mxu2 }
 0xd5e   :  { %v958_v14 = vadd.f32 %v1880_v12, %v957_v11 }
 0xd65   :  { %v959_v13 = vpop.f32.mrf.mxu2 }
 0xd66   :  { %v960_v15 = vadd.f32 %v1880_v12, %v959_v13 }
 0xd68   :  { %v2394_v16 = vpack.c.bf16 %v960_v15, %v958_v14 }
 0xd6a   :  { %1055 = vrot.lane.b32.xlu0 %v2394_v16, %s1990_s28  ;;  %1057 = vrot.lane.b32.xlu2 %v2394_v16, %s1993_s29  ;;  %s2719_s28 = smov 56   ;;  %s2721_s29 = smov 48  }
 0xd6b   :  { %964 = vrot.lane.b32.xlu1 %v2394_v16, %s1987_s5  ;;  %s2718_s5 = smov 64  }
 0xd72   :  { %1150 = vrot.lane.b32.xlu0 %v2394_v16, %s1994_s30  ;;  %1148 = vrot.lane.b32.xlu2 %v2394_v16, %s1992_s4  ;;  %s2720_s4 = smov 40   ;;  %s2728_s30 = smov 8  }
 0xd73   :  { %1243 = vrot.lane.b32.xlu1 %v2394_v16, %s1995_s0  ;;  %s2729_s0 = smov 16  }
 0xd7a   :  { %1241 = vrot.lane.b32.xlu0 %v2394_v16, %s2717_s7 }
 0xdc4   :  { %v1058_v21 = vpop.permute.xlu2 %1057 }
 0xdc5   :  { %v1063_v24 = vsel %vm256_vm1, %v1058_v21, 0 }
 0xdc6   :  { %1072 = vmatpush.bf16.xpose.msra.mxu1 %v1063_v24 }
 0xdcc   :  { %v1149_v35 = vpop.permute.xlu2 %1148 }
 0xddc   :  { %v1056_v25 = vpop.permute.xlu0 %1055 }
 0xddd   :  { %v965_v22 = vpop.permute.xlu1 %964  ;;  %1736 = vmatmul.msk.bf16.vlgmr.msra.gmra.mxu1 %vm256_vm1, %v1056_v25 }
 0xdde   :  { %v970_v27 = vsel %vm256_vm1, %v965_v22, 0 }
 0xddf   :  { %979 = vmatpush.bf16.xpose.msra.mxu0 %v970_v27 }
 0xde4   :  { %v1151_v31 = vpop.permute.xlu0 %1150 }
 0xde5   :  { %v1156_v30 = vsel %vm256_vm1, %v1151_v31, 0  ;;  %v1244_v23 = vpop.permute.xlu1 %1243 }
 0xde6   :  { %v1249_v32 = vsel %vm256_vm1, %v1244_v23, 0  ;;  %1734 = vmatmul.msk.bf16.vlgmr.msra.gmra.mxu0 %vm256_vm1, %v2394_v16 }
 0xde7   :  { %1165 = vmatpush.bf16.xpose.msrb.mxu0 %v1156_v30  ;;  %1258 = vmatpush.bf16.xpose.msrb.mxu1 %v1249_v32 }
 0xdec   :  { %v1242_v33 = vpop.permute.xlu0 %1241 }
 0xdee   :  { %1740 = vmatmul.msk.bf16.vlgmr.msrb.gmra.mxu1 %vm256_vm1, %v1242_v33 }
 0xdf6   :  { %1738 = vmatmul.msk.bf16.vlgmr.msrb.gmra.mxu0 %vm256_vm1, %v1149_v35 }
 0xe5a   :  { %v1074_v36 = vpop.f32.mrf.mxu1 }
 0xe5b   :  { %v1075_v26 = vadd.f32 %v1074_v36, %v2210_v34 }
 0xe5d   :  { %v1079_v28 = vsel %vm277_vm2, %v1075_v26, -inf }
 0xe5e   :  { %1080 = vmax.xlane.f32.xlu0 %v1079_v28 }
 0xe62   :  { %v1076_v37 = vpop.f32.mrf.mxu1 }
 0xe63   :  { %v981_v29 = vpop.f32.mrf.mxu0  ;;  %v1077_v41 = vadd.f32 %v1076_v37, %v2216_v38 }
 0xe64   :  { %v982_v39 = vadd.f32 %v981_v29, %v2210_v34 }
 0xe65   :  { %v1082_v44 = vsel %vm277_vm2, %v1077_v41, -inf }
 0xe66   :  { %v986_v40 = vsel %vm277_vm2, %v982_v39, -inf }
 0xe67   :  { %987 = vmax.xlane.f32.xlu1 %v986_v40 }
 0xe6b   :  { %v983_v17 = vpop.f32.mrf.mxu0  ;;  %v1260_v43 = vpop.f32.mrf.mxu1 }
 0xe6c   :  { %v984_v42 = vadd.f32 %v983_v17, %v2216_v38  ;;  %v1261_v46 = vadd.f32 %v1260_v43, %v2210_v34 }
 0xe6e   :  { %v989_v18 = vsel %vm277_vm2, %v984_v42, -inf  ;;  %v1265_v50 = vsel %vm277_vm2, %v1261_v46, -inf }
 0xe6f   :  { %990 = vmax.xlane.f32.xlu2 %v989_v18  ;;  %1083 = vmax.xlane.f32.xlu1 %v1082_v44 }
 0xe73   :  { %v1167_v47 = vpop.f32.mrf.mxu0  ;;  %v1262_v52 = vpop.f32.mrf.mxu1 }
 0xe74   :  { %v1168_v48 = vadd.f32 %v1167_v47, %v2210_v34  ;;  %v1263_v53 = vadd.f32 %v1262_v52, %v2216_v38 }
 0xe76   :  { %v1172_v49 = vsel %vm277_vm2, %v1168_v48, -inf  ;;  %v1268_v56 = vsel %vm277_vm2, %v1263_v53, -inf }
 0xe77   :  { %1173 = vmax.xlane.f32.xlu2 %v1172_v49  ;;  %1266 = vmax.xlane.f32.xlu1 %v1265_v50 }
 0xe7b   :  { %v1169_v54 = vpop.f32.mrf.mxu0 }
 0xe7c   :  { %v1170_v51 = vadd.f32 %v1169_v54, %v2216_v38 }
 0xe7e   :  { %v1175_v55 = vsel %vm277_vm2, %v1170_v51, -inf }
 0xe7f   :  { %1176 = vmax.xlane.f32.xlu0 %v1175_v55  ;;  %1269 = vmax.xlane.f32.xlu2 %v1268_v56 }
 0xe97   :  { %1035 = vrot.lane.b32.xlu2 %v2394_v16, %s2718_s5 }
 0xed1   :  { %v1081_v34 = vpop.xlane.xlu0 %1080 }
 0xed2   :  { %v1085_v57 = vsub.f32 %v1075_v26, %v1081_v34 }
 0xed4   :  { %v1087_v58 = vmul.f32 1.442695, %v1085_v57 }
 0xed6   :  { %1940 = vpow2.f32 %v1087_v58 }
 0xeda   :  { %v988_v59 = vpop.xlane.xlu1 %987 }
 0xedb   :  { %v992_v60 = vsub.f32 %v982_v39, %v988_v59 }
 0xedc   :  { %v2437_v61 = vpop.eup %1940 }
 0xedd   :  { %v994_v62 = vmul.f32 1.442695, %v992_v60  ;;  %v1091_v38 = vsel %vm277_vm2, %v2437_v61, 0.0 }
 0xede   :  { %1092 = vadd.xlane.f32.xlu2 %v1091_v38 }
 0xedf   :  { %1942 = vpow2.f32 %v994_v62 }
 0xee2   :  { %v991_v63 = vpop.xlane.xlu2 %990  ;;  %v1084_v0 = vpop.xlane.xlu1 %1083 }
 0xee3   :  { %v993_v1 = vsub.f32 %v984_v42, %v991_v63  ;;  %v1086_v2 = vsub.f32 %v1077_v41, %v1084_v0 }
 0xee5   :  { %v2441_v3 = vpop.eup %1942  ;;  %v996_v4 = vmul.f32 1.442695, %v993_v1  ;;  %v1089_v5 = vmul.f32 1.442695, %v1086_v2 }
 0xee6   :  { %v998_v6 = vsel %vm277_vm2, %v2441_v3, 0.0 }
 0xee7   :  { %1944 = vpow2.f32 %v996_v4  ;;  %999 = vadd.xlane.f32.xlu0 %v998_v6 }
 0xee8   :  { %1946 = vpow2.f32 %v1089_v5 }
 0xeea   :  { %v1174_v20 = vpop.xlane.xlu2 %1173  ;;  %v1267_v7 = vpop.xlane.xlu1 %1266 }
 0xeeb   :  { %v1178_v8 = vsub.f32 %v1168_v48, %v1174_v20  ;;  %v1271_v10 = vsub.f32 %v1261_v46, %v1267_v7 }
 0xeed   :  { %v2445_v11 = vpop.eup %1944  ;;  %v1180_v12 = vmul.f32 1.442695, %v1178_v8  ;;  %v1273_v13 = vmul.f32 1.442695, %v1271_v10 }
 0xeee   :  { %v2447_v14 = vpop.eup %1946  ;;  %v1001_v15 = vsel %vm277_vm2, %v2445_v11, 0.0 }
 0xeef   :  { %1948 = vpow2.f32 %v1180_v12  ;;  %1002 = vadd.xlane.f32.xlu1 %v1001_v15  ;;  %v1094_v21 = vsel %vm277_vm2, %v2447_v14, 0.0 }
 0xef0   :  { %1950 = vpow2.f32 %v1273_v13  ;;  %1095 = vadd.xlane.f32.xlu0 %v1094_v21 }
 0xef2   :  { %v1177_v24 = vpop.xlane.xlu0 %1176  ;;  %v1270_v25 = vpop.xlane.xlu2 %1269 }
 0xef3   :  { %v1179_v22 = vsub.f32 %v1170_v51, %v1177_v24  ;;  %v1272_v27 = vsub.f32 %v1263_v53, %v1270_v25 }
 0xef5   :  { %v2453_v31 = vpop.eup %1948  ;;  %v1182_v30 = vmul.f32 1.442695, %v1179_v22  ;;  %v1275_v23 = vmul.f32 1.442695, %v1272_v27 }
 0xef6   :  { %v2455_v32 = vpop.eup %1950  ;;  %v1184_v33 = vsel %vm277_vm2, %v2453_v31, 0.0 }
 0xef7   :  { %1952 = vpow2.f32 %v1182_v30  ;;  %1185 = vadd.xlane.f32.xlu1 %v1184_v33  ;;  %v1277_v35 = vsel %vm277_vm2, %v2455_v32, 0.0 }
 0xef8   :  { %1954 = vpow2.f32 %v1275_v23  ;;  %1278 = vadd.xlane.f32.xlu0 %v1277_v35 }
 0xefa   :  { %v1036_v36 = vpop.permute.xlu2 %1035 }
 0xefb   :  { %1048 = vmatpush.bf16.msra.mxu3 %v1036_v36 }
 0xefd   :  { %v2461_v26 = vpop.eup %1952 }
 0xefe   :  { %v2463_v28 = vpop.eup %1954  ;;  %v1187_v29 = vsel %vm277_vm2, %v2461_v26, 0.0 }
 0xeff   :  { %1188 = vadd.xlane.f32.xlu2 %v1187_v29  ;;  %v1280_v37 = vsel %vm277_vm2, %v2463_v28, 0.0 }
 0xf00   :  { %1281 = vadd.xlane.f32.xlu1 %v1280_v37 }
 0xf0c   :  { %1128 = vrot.lane.b32.xlu0 %v2394_v16, %s2719_s28 }
 0xf17   :  { %1314 = vrot.lane.b32.xlu2 %v2394_v16, %s2720_s4 }
 0xf19   :  { %1221 = vrot.lane.b32.xlu1 %v2394_v16, %s2721_s29 }
 0xf51   :  { %v2475_v40 = vpop.xlane.xlu2 %1092 }
 0xf52   :  { %v1108_v22 = vand.u32 2147483648, %v2475_v40  ;;  %v1106_v30 = vand.u32 2147483647, %v2475_v40 }
 0xf54   :  { %v1109_v37 = vor.u32 1.1754944e-38, %v1108_v22 }
 0xf5a   :  { %v1000_v39 = vpop.xlane.xlu0 %999 }
 0xf5b   :  { %1956 = vrcp.f32 %v1000_v39  ;;  %v1013_v56 = vand.u32 2147483647, %v1000_v39  ;;  %v1015_v34 = vand.u32 2147483648, %v1000_v39  ;;  %vm1009_vm13 = vweird.f32 %v1000_v39 }
 0xf5c   :  { %1958 = vrcp.f32 %v2475_v40 }
 0xf5d   :  { %vm1014_vm5 = vcmp.eq.f32.partialorder %v1013_v56, 8.507059e+37  ;;  %v1016_v2 = vor.u32 1.1754944e-38, %v1015_v34 }
 0xf61   :  { %v1957_v41 = vpop.eup %1956 }
 0xf62   :  { %v1005_v17 = vmul.f32 %v1957_v41, %v1000_v39  ;;  %v1003_v42 = vpop.xlane.xlu1 %1002  ;;  %v2480_v18 = vpop.eup %1958  ;;  %vm1010_vm12 = vweird.f32 %v1957_v41 }
 0xf63   :  { %v2478_v43 = vpop.xlane.xlu0 %1095  ;;  %1960 = vrcp.f32 %v1003_v42  ;;  %v1098_v16 = vmul.f32 %v2480_v18, %v2475_v40  ;;  %v1030_v58 = vand.u32 2147483648, %v1003_v42  ;;  %v1028_v60 = vand.u32 2147483647, %v1003_v42  ;;  %vm2495_vm15 = vmor %vm1009_vm13, %vm1010_vm12 }
 0xf64   :  { %v1006_v44 = vsub.f32 1.0, %v1005_v17  ;;  %1962 = vrcp.f32 %v2478_v43  ;;  %vm1024_vm0 = vweird.f32 %v1003_v42  ;;  %vm1103_vm4 = vweird.f32 %v2480_v18 }
 0xf65   :  { %v1099_v52 = vsub.f32 1.0, %v1098_v16  ;;  %v1031_v4 = vor.u32 1.1754944e-38, %v1030_v58  ;;  %vm1029_vm8 = vcmp.eq.f32.partialorder %v1028_v60, 8.507059e+37  ;;  %v1123_v12 = vand.u32 2147483648, %v2478_v43 }
 0xf66   :  { %v1007_v46 = vmul.f32 %v1957_v41, %v1006_v44  ;;  %vm1117_vm11 = vweird.f32 %v2478_v43  ;;  %v1121_v21 = vand.u32 2147483647, %v2478_v43  ;;  %vm1102_vm12 = vweird.f32 %v2475_v40 }
 0xf67   :  { %v1100_v62 = vmul.f32 %v2480_v18, %v1099_v52  ;;  %v1124_v33 = vor.u32 1.1754944e-38, %v1123_v12 }
 0xf68   :  { %v1008_v54 = vadd.f32 %v1957_v41, %v1007_v46 }
 0xf69   :  { %v1961_v47 = vpop.eup %1960  ;;  %v1101_v8 = vadd.f32 %v2480_v18, %v1100_v62 }
 0xf6a   :  { %v2485_v48 = vpop.eup %1962  ;;  %v1020_v49 = vmul.f32 %v1961_v47, %v1003_v42  ;;  %v2487_v50 = vpop.xlane.xlu1 %1185  ;;  %vm1025_vm14 = vweird.f32 %v1961_v47  ;;  %v1012_v0 = vsel %vm2495_vm15, %v1957_v41, %v1008_v54  ;;  %vm1122_vm15 = vcmp.eq.f32.partialorder %v1121_v21, 8.507059e+37 }
 0xf6b   :  { %v1113_v53 = vmul.f32 %v2485_v48, %v2478_v43  ;;  %v2491_v55 = vpop.xlane.xlu0 %1278  ;;  %1964 = vrcp.f32 %v2487_v50  ;;  %vm1026_vm6 = vmor %vm1024_vm0, %vm1025_vm14  ;;  %vm1118_vm7 = vweird.f32 %v2485_v48  ;;  %v1017_v10 = vsel %vm1014_vm5, %v1016_v2, %v1012_v0 }
 0xf6c   :  { %v1021_v51 = vsub.f32 1.0, %v1020_v49  ;;  %1966 = vrcp.f32 %v2491_v55  ;;  %vm1119_vm13 = vmor %vm1117_vm11, %vm1118_vm7  ;;  %v1018_v23 = vmul.f32 %v2441_v3, %v1017_v10  ;;  %vm1107_vm0 = vcmp.eq.f32.partialorder %v1106_v30, 8.507059e+37 }
 0xf6d   :  { %v1114_v57 = vsub.f32 1.0, %v1113_v53  ;;  %vm1104_vm14 = vmor %vm1102_vm12, %vm1103_vm4  ;;  %vm1195_vm7 = vweird.f32 %v2487_v50  ;;  %v1199_v58 = vand.u32 2147483647, %v2487_v50 }
 0xf6e   :  { %v1022_v59 = vmul.f32 %v1961_v47, %v1021_v51  ;;  %v1105_v35 = vsel %vm1104_vm14, %v2480_v18, %v1101_v8 }
 0xf6f   :  { %v1115_v63 = vmul.f32 %v2485_v48, %v1114_v57  ;;  %v1110_v3 = vsel %vm1107_vm0, %v1109_v37, %v1105_v35 }
 0xf70   :  { %v1023_v1 = vadd.f32 %v1961_v47, %v1022_v59  ;;  %v1201_v59 = vand.u32 2147483648, %v2487_v50 }
 0xf71   :  { %v2504_v5 = vpop.eup %1964  ;;  %v1116_v6 = vadd.f32 %v2485_v48, %v1115_v63 }
 0xf72   :  { %v1027_v20 = vsel %vm1026_vm6, %v1961_v47, %v1023_v1  ;;  %v2508_v7 = vpop.xlane.xlu2 %1188  ;;  %v2518_v25 = vpop.eup %1966  ;;  %v1191_v27 = vmul.f32 %v2504_v5, %v2487_v50  ;;  %v1111_v47 = vmul.f32 %v2437_v61, %v1110_v3  ;;  %vm1196_vm4 = vweird.f32 %v2504_v5  ;;  %v1812_v3 = vld [vmem:[%s2677_s8 + $0x10] sm:$0xff] }
 0xf73   :  { %v1032_v13 = vsel %vm1029_vm8, %v1031_v4, %v1027_v20  ;;  %v2512_v15 = vpop.xlane.xlu1 %1281  ;;  %1968 = vrcp.f32 %v2508_v7  ;;  %v1284_v36 = vmul.f32 %v2518_v25, %v2491_v55  ;;  %vm1210_vm6 = vweird.f32 %v2508_v7 }
 0xf74   :  { %v1033_v24 = vmul.f32 %v2445_v11, %v1032_v13  ;;  %v1120_v11 = vsel %vm1119_vm13, %v2485_v48, %v1116_v6  ;;  %1970 = vrcp.f32 %v2512_v15  ;;  %v1192_v40 = vsub.f32 1.0, %v1191_v27  ;;  %vm2563_vm13 = vmor %vm1195_vm7, %vm1196_vm4 }
 0xf75   :  { %v1125_v39 = vsel %vm1122_vm15, %v1124_v33, %v1120_v11  ;;  %v1285_v44 = vsub.f32 1.0, %v1284_v36  ;;  %v1214_v61 = vand.u32 2147483647, %v2508_v7  ;;  %vm1289_vm12 = vweird.f32 %v2518_v25 }
 0xf76   :  { %v1034_v29 = vpack.c.bf16 %v1033_v24, %v1018_v23  ;;  %v1126_v43 = vmul.f32 %v2447_v14, %v1125_v39  ;;  %v1193_v18 = vmul.f32 %v2504_v5, %v1192_v40  ;;  %v1216_v14 = vand.u32 2147483648, %v2508_v7 }
 0xf77   :  { %v1286_v54 = vmul.f32 %v2518_v25, %v1285_v44  ;;  %v1309_v63 = vand.u32 2147483648, %v2512_v15  ;;  %vm1303_vm14 = vweird.f32 %v2512_v15  ;;  %v1307_v2 = vand.u32 2147483647, %v2512_v15 }
 0xf78   :  { %1735 = vmatmul.msk.bf16.vlgmr.msra.gmra.mxu3 %vm277_vm2, %v1034_v29  ;;  %v1127_v51 = vpack.c.bf16 %v1126_v43, %v1111_v47  ;;  %v1194_v56 = vadd.f32 %v2504_v5, %v1193_v18  ;;  %v1217_v1 = vor.u32 1.1754944e-38, %v1216_v14  ;;  %vm1288_vm15 = vweird.f32 %v2491_v55 }
 0xf79   :  { %v1969_v41 = vpop.eup %1968  ;;  %v1287_v0 = vadd.f32 %v2518_v25, %v1286_v54  ;;  %v1294_v4 = vand.u32 2147483648, %v2491_v55  ;;  %vm1215_vm0 = vcmp.eq.f32.partialorder %v1214_v61, 8.507059e+37  ;;  %v1292_v20 = vand.u32 2147483647, %v2491_v55  ;;  %vm1290_vm4 = vmor %vm1288_vm15, %vm1289_vm12 }
 0xf7a   :  { %v1206_v17 = vmul.f32 %v1969_v41, %v2508_v7  ;;  %v1971_v42 = vpop.eup %1970  ;;  %vm1211_vm5 = vweird.f32 %v1969_v41  ;;  %v1315_v53 = vpop.permute.xlu2 %1314  ;;  %v1198_v6 = vsel %vm2563_vm13, %v2504_v5, %v1194_v56  ;;  %v1202_v7 = vor.u32 1.1754944e-38, %v1201_v59 }
 0xf7b   :  { %v1299_v46 = vmul.f32 %v1971_v42, %v2512_v15  ;;  %vm2551_vm8 = vmor %vm1210_vm6, %vm1211_vm5  ;;  %vm1304_vm11 = vweird.f32 %v1971_v42  ;;  %vm1200_vm6 = vcmp.eq.f32.partialorder %v1199_v58, 8.507059e+37  ;;  %v1310_v12 = vor.u32 1.1754944e-38, %v1309_v63 }
 0xf7c   :  { %v1207_v16 = vsub.f32 1.0, %v1206_v17  ;;  %vm1305_vm5 = vmor %vm1303_vm14, %vm1304_vm11  ;;  %v1291_v13 = vsel %vm1290_vm4, %v2518_v25, %v1287_v0  ;;  %v1203_v15 = vsel %vm1200_vm6, %v1202_v7, %v1198_v6  ;;  %vm1308_vm7 = vcmp.eq.f32.partialorder %v1307_v2, 8.507059e+37 }
 0xf7d   :  { %v1300_v52 = vsub.f32 1.0, %v1299_v46  ;;  %v1295_v21 = vor.u32 1.1754944e-38, %v1294_v4  ;;  %v1204_v55 = vmul.f32 %v2453_v31, %v1203_v15  ;;  %v1814_v15 = vld [vmem:[%s2682_s12 + $0x10] sm:$0xff]  ;;  %vm1641_vm4 = vcmask 1040384  }
 0xf7e   :  { %v1129_v48 = vpop.permute.xlu0 %1128  ;;  %v1208_v49 = vmul.f32 %v1969_v41, %v1207_v16  ;;  %vm1648_vm6 = vcmask 254976  }
 0xf7f   :  { %1141 = vmatpush.bf16.msra.mxu2 %v1129_v48  ;;  %v1301_v57 = vmul.f32 %v1971_v42, %v1300_v52 }
 0xf80   :  { %v1209_v34 = vadd.f32 %v1969_v41, %v1208_v49 }
 0xf81   :  { %v1302_v38 = vadd.f32 %v1971_v42, %v1301_v57 }
 0xf82   :  { %1737 = vmatmul.msk.bf16.vlgmr.msra.gmra.mxu2 %vm277_vm2, %v1127_v51  ;;  %v1213_v62 = vsel %vm2551_vm8, %v1969_v41, %v1209_v34  ;;  %vm1293_vm8 = vcmp.eq.f32.partialorder %v1292_v20, 8.507059e+37  ;;  %v1813_v41 = vld [vmem:[%s2677_s8 + $0x18] sm:$0xff]  ;;  %v1881_v34 = vld [vmem:[%s2678_s9 + $0x1] ss:$0 sm:$0xff] }
 0xf83   :  { %1327 = vmatpush.bf16.msrb.mxu2 %v1315_v53  ;;  %v1218_v8 = vsel %vm1215_vm0, %v1217_v1, %v1213_v62  ;;  %v1306_v10 = vsel %vm1305_vm5, %v1971_v42, %v1302_v38  ;;  %v1296_v22 = vsel %vm1293_vm8, %v1295_v21, %v1291_v13  ;;  %1396 = vmatpush.bf16.msra.mxu0 %v1813_v41 }
 0xf84   :  { %v1219_v5 = vmul.f32 %v2461_v26, %v1218_v8  ;;  %v1311_v24 = vsel %vm1308_vm7, %v1310_v12, %v1306_v10  ;;  %v1297_v11 = vmul.f32 %v2455_v32, %v1296_v22  ;;  %v1815_v12 = vld [vmem:[%s2682_s12 + $0x18] sm:$0xff]  ;;  %vm1657_vm7 = vcmask 1024  }
 0xf85   :  { %v1312_v30 = vmul.f32 %v2463_v28, %v1311_v24 }
 0xf86   :  { %v1220_v23 = vpack.c.bf16 %v1219_v5, %v1204_v55 }
 0xf87   :  { %v1313_v25 = vpack.c.bf16 %v1312_v30, %v1297_v11  ;;  %1397 = vmatpush.bf16.msra.mxu0 %v1812_v3 }
 0xf8b   :  { %v1222_v27 = vpop.permute.xlu1 %1221 }
 0xf8c   :  { %1234 = vmatpush.bf16.msrb.mxu3 %v1222_v27 }
 0xf8f   :  { %1739 = vmatmul.msk.bf16.vlgmr.msrb.gmra.mxu3 %vm277_vm2, %v1220_v23 }
 0xf90   :  { %1496 = vmatpush.bf16.msra.mxu3 %v1815_v12 }
 0xf92   :  { %1741 = vmatmul.msk.bf16.vlgmr.msrb.gmra.mxu2 %vm277_vm2, %v1313_v25 }
 0xf94   :  { %1497 = vmatpush.bf16.msra.mxu3 %v1814_v15 }
 0xffb   :  { %v1050_v33 = vpop.f32.mrf.mxu3 }
0x1003   :  { %v1052_v26 = vpop.f32.mrf.mxu3 }
0x1005   :  { %v1143_v35 = vpop.f32.mrf.mxu2 }
0x100d   :  { %v1145_v36 = vpop.f32.mrf.mxu2 }
0x100e   :  { %v1854_v29 = vpack.i.bf16 %v1145_v36, %v1143_v35 }
0x1010   :  { %1855 = vrot.lane.b32.xlu0 %v1854_v29, %s2728_s30 }
0x1012   :  { %v1236_v31 = vpop.f32.mrf.mxu3 }
0x1015   :  { %v1329_v37 = vpop.f32.mrf.mxu2 }
0x101a   :  { %v1238_v39 = vpop.f32.mrf.mxu3 }
0x101b   :  { %v1859_v28 = vpack.i.bf16 %v1238_v39, %v1236_v31  ;;  %v1882_v31 = vld [vmem:[%s2679_s10 + $0x1] ss:$0 sm:$0xff] }
0x101d   :  { %v1331_v40 = vpop.f32.mrf.mxu2  ;;  %1860 = vrot.lane.b32.xlu2 %v1859_v28, %s2729_s0 }
0x101e   :  { %v1864_v32 = vpack.i.bf16 %v1331_v40, %v1329_v37  ;;  %v1883_v40 = vld [vmem:[%s2680_s11 + $0x1] ss:$0 sm:$0xff] }
0x1020   :  { %1865 = vrot.lane.b32.xlu1 %v1864_v32, %s2730_s25 }
0x1077   :  { %v1861_v44 = vpop.permute.xlu2 %1860 }
0x1078   :  { %v1863_v46 = vunpack.i.h.bf16 %v1861_v44  ;;  %v1862_v47 = vunpack.i.l.bf16 %v1861_v44  ;;  %v1819_v44 = vld [vmem:[%s2684_s14 + $0x38] sm:$0xff] }
0x1079   :  { %1568 = vmatpush.bf16.msra.mxu1 %v1819_v44 }
0x1082   :  { %v1856_v17 = vpop.permute.xlu0 %1855 }
0x1083   :  { %v1858_v42 = vunpack.i.h.bf16 %v1856_v17  ;;  %v1857_v43 = vunpack.i.l.bf16 %v1856_v17 }
0x1085   :  { %v1358_v18 = vsel %vm256_vm1, %v1050_v33, %v1857_v43  ;;  %v1359_v16 = vsel %vm256_vm1, %v1052_v26, %v1858_v42 }
0x1086   :  { %v1360_v53 = vsel %vm277_vm2, %v1358_v18, %v1862_v47  ;;  %v1361_v54 = vsel %vm277_vm2, %v1359_v16, %v1863_v46  ;;  %v1818_v18 = vld [vmem:[%s2684_s14 + $0x30] sm:$0xff]  ;;  %v1817_v16 = vld [vmem:[%s2684_s14 + $0x28] sm:$0xff]  ;;  %v1884_v46 = vld [vmem:[%s2681_s13 + $0x1] ss:$0 sm:$0xff] }
0x1087   :  { %1569 = vmatpush.bf16.msra.mxu1 %v1818_v18  ;;  %v1816_v47 = vld [vmem:[%s2684_s14 + $0x20] sm:$0xff] }
0x108b   :  { %1570 = vmatpush.bf16.msra.mxu1 %v1817_v16 }
0x108f   :  { %1571 = vmatpush.bf16.msra.mxu1 %v1816_v47  ;;  %v1886_v47 = vld [vmem:[%s2685_s16 + $0x1] ss:$0 sm:$0xff] }
0x1092   :  { %v1866_v48 = vpop.permute.xlu1 %1865 }
0x1093   :  { %v1868_v49 = vunpack.i.h.bf16 %v1866_v48  ;;  %v1867_v52 = vunpack.i.l.bf16 %v1866_v48 }
0x1095   :  { %v1363_v14 = vsel %vm654_vm10, %v1361_v54, %v1868_v49  ;;  %v1362_v51 = vsel %vm654_vm10, %v1360_v53, %v1867_v52 }
0x1096   :  { %v1364_v56 = vpack.c.bf16 %v1363_v14, %v1362_v51 }
0x1098   :  { %1755 = vmatmul.msk.bf16.vlgmr.msra.gmra.mxu0 %vm135_vm9, %v1364_v56 }
0x1115   :  { %v1399_v61 = vpop.f32.mrf.mxu0 }
0x1116   :  { %v1400_v57 = vadd.f32 %v1881_v34, %v1399_v61 }
0x1118   :  { %v1404_v58 = vadd.f32 %v1400_v57, %v2384_v19 }
0x111a   :  { %v1410_v59 = vsel %vm135_vm9, %v1404_v58, 0.0 }
0x111b   :  { %1411 = vadd.xlane.f32.xlu0 %v1410_v59 }
0x111d   :  { %v1401_v60 = vpop.f32.mrf.mxu0 }
0x111e   :  { %v1402_v62 = vadd.f32 %v1881_v34, %v1401_v60 }
0x1120   :  { %v1405_v38 = vadd.f32 %v1402_v62, %v2386_v9 }
0x1122   :  { %v1413_v63 = vsel %vm135_vm9, %v1405_v38, 0.0 }
0x1123   :  { %1414 = vadd.xlane.f32.xlu2 %v1413_v63 }
0x118e   :  { %v1412_v0 = vpop.xlane.xlu0 %1411 }
0x118f   :  { %v1416_v50 = vmul.f32 %v1412_v0, %v2171_v45 }
0x1191   :  { %v1418_v1 = vsub.f32 %v1404_v58, %v1416_v50 }
0x1193   :  { %v1420_v2 = vmul.f32 %v1418_v1, %v1418_v1 }
0x1195   :  { %v1422_v4 = vsel %vm135_vm9, %v1420_v2, 0.0 }
0x1196   :  { %v1415_v6 = vpop.xlane.xlu2 %1414  ;;  %1423 = vadd.xlane.f32.xlu1 %v1422_v4 }
0x1197   :  { %v1417_v19 = vmul.f32 %v1415_v6, %v2171_v45 }
0x1199   :  { %v1419_v20 = vsub.f32 %v1405_v38, %v1417_v19  ;;  %v1885_v19 = vld [vmem:[%s2683_s15 + $0x1] ss:$0 sm:$0xff] }
0x119b   :  { %v1421_v7 = vmul.f32 %v1419_v20, %v1419_v20 }
0x119d   :  { %v1425_v8 = vsel %vm135_vm9, %v1421_v7, 0.0 }
0x119e   :  { %1426 = vadd.xlane.f32.xlu0 %v1425_v8 }
0x1209   :  { %v1424_v9 = vpop.xlane.xlu1 %1423 }
0x120a   :  { %v1428_v10 = vmul.f32 %v1424_v9, %v2171_v45 }
0x120c   :  { %v1430_v13 = vadd.f32 1e-12, %v1428_v10 }
0x120e   :  { %1972 = vrsqrt.f32 %v1430_v13  ;;  %vm1438_vm2 = vweird.f32 %v1430_v13 }
0x1211   :  { %v1427_v21 = vpop.xlane.xlu0 %1426 }
0x1212   :  { %v1429_v5 = vmul.f32 %v1427_v21, %v2171_v45 }
0x1214   :  { %v1973_v24 = vpop.eup %1972  ;;  %v1431_v22 = vadd.f32 1e-12, %v1429_v5 }
0x1215   :  { %v1433_v55 = vmul.f32 %v1973_v24, %v1430_v13  ;;  %vm1439_vm1 = vweird.f32 %v1973_v24 }
0x1216   :  { %1974 = vrsqrt.f32 %v1431_v22  ;;  %vm1440_vm10 = vmor %vm1438_vm2, %vm1439_vm1  ;;  %vm1448_vm12 = vweird.f32 %v1431_v22 }
0x1217   :  { %v1434_v27 = vmul.f32 %v1973_v24, %v1433_v55 }
0x1219   :  { %v1435_v30 = vmul.f32 0.5, %v1434_v27 }
0x121b   :  { %v1436_v23 = vsub.f32 1.5, %v1435_v30 }
0x121c   :  { %v1975_v11 = vpop.eup %1974 }
0x121d   :  { %v1437_v25 = vmul.f32 %v1973_v24, %v1436_v23  ;;  %v1443_v33 = vmul.f32 %v1975_v11, %v1431_v22  ;;  %vm1449_vm11 = vweird.f32 %v1975_v11 }
0x121e   :  { %vm1450_vm13 = vmor %vm1448_vm12, %vm1449_vm11 }
0x121f   :  { %v1444_v35 = vmul.f32 %v1975_v11, %v1443_v33  ;;  %v1441_v26 = vsel %vm1440_vm10, %v1973_v24, %v1437_v25 }
0x1220   :  { %v1452_v37 = vmul.f32 %v1441_v26, %v1418_v1 }
0x1221   :  { %v1445_v36 = vmul.f32 0.5, %v1444_v35 }
0x1222   :  { %v1457_v32 = vmul.f32 %v1882_v31, %v1452_v37 }
0x1223   :  { %v1446_v29 = vsub.f32 1.5, %v1445_v36 }
0x1224   :  { %v1462_v17 = vadd.f32 %v1883_v40, %v1457_v32 }
0x1225   :  { %v1447_v39 = vmul.f32 %v1975_v11, %v1446_v29 }
0x1227   :  { %v1451_v28 = vsel %vm1450_vm13, %v1975_v11, %v1447_v39  ;;  %v25_v39 = vstv %s2688_s19 }
0x1228   :  { %v1453_v41 = vmul.f32 %v1451_v28, %v1419_v20  ;;  %26 = vst [vmem:[#allocation2] sm:$0x1] %v25_v39 }
0x122a   :  { %v1458_v3 = vmul.f32 %v1882_v31, %v1453_v41 }
0x122c   :  { %v1463_v42 = vadd.f32 %v1883_v40, %v1458_v3 }
0x122e   :  { %v1464_v43 = vpack.c.bf16 %v1463_v42, %v1462_v17 }
0x1230   :  { %1771 = vmatmul.msk.bf16.vlgmr.msra.gmra.mxu3 %vm135_vm9, %v1464_v43 }
0x12b3   :  { %v1499_v48 = vpop.f32.mrf.mxu3 }
0x12b4   :  { %v1500_v49 = vadd.f32 %v1884_v46, %v1499_v48 }
0x12b6   :  { %v1506_v52 = vmul.f32 0.044715, %v1500_v49  ;;  %v1504_v0 = vmul.f32 0.5, %v1500_v49 }
0x12b8   :  { %v1508_v53 = vmul.f32 %v1506_v52, %v1500_v49 }
0x12ba   :  { %v1510_v54 = vmul.f32 %v1508_v53, %v1500_v49 }
0x12bb   :  { %v1501_v14 = vpop.f32.mrf.mxu3 }
0x12bc   :  { %v1512_v51 = vadd.f32 %v1510_v54, %v1500_v49  ;;  %v1502_v56 = vadd.f32 %v1884_v46, %v1501_v14  ;;  %v1887_v54 = vld [vmem:[%s2686_s17 + $0x1] ss:$0 sm:$0xff] }
0x12be   :  { %v1507_v34 = vmul.f32 0.044715, %v1502_v56  ;;  %v1514_v61 = vmul.f32 0.7978846, %v1512_v51  ;;  %v1505_v50 = vmul.f32 0.5, %v1502_v56 }
0x12bf   :  { %v1888_v51 = vld [vmem:[%s2687_s18] ss:$0 sm:$0xff] }
0x12c0   :  { %v1509_v57 = vmul.f32 %v1507_v34, %v1502_v56  ;;  %1976 = vtanh.f32 %v1514_v61 }
0x12c2   :  { %v1511_v58 = vmul.f32 %v1509_v57, %v1502_v56 }
0x12c4   :  { %v1513_v59 = vadd.f32 %v1511_v58, %v1502_v56 }
0x12c6   :  { %v1515_v60 = vmul.f32 0.7978846, %v1513_v59  ;;  %v1977_v62 = vpop.eup %1976  ;;  %v1889_v59 = vld [vmem:[#allocation2] ss:$0 sm:$0xff] }
0x12c7   :  { %v1518_v38 = vadd.f32 1.0, %v1977_v62 }
0x12c8   :  { %1978 = vtanh.f32 %v1515_v60 }
0x12c9   :  { %v1520_v2 = vmul.f32 %v1518_v38, %v1504_v0 }
0x12ce   :  { %v1979_v63 = vpop.eup %1978 }
0x12cf   :  { %v1519_v1 = vadd.f32 1.0, %v1979_v63 }
0x12d1   :  { %v1521_v4 = vmul.f32 %v1519_v1, %v1505_v50 }
0x12d3   :  { %v1522_v6 = vpack.c.bf16 %v1521_v4, %v1520_v2 }
0x12d5   :  { %1797 = vmatmul.msk.bf16.vlgmr.msra.gmra.mxu1 %vm846_vm3, %v1522_v6 }
0x1352   :  { %v1573_v20 = vpop.f32.mrf.mxu1 }
0x1353   :  { %v1574_v7 = vadd.f32 %v1885_v19, %v1573_v20 }
0x1355   :  { %v1578_v8 = vadd.f32 %v1574_v7, %v1462_v17 }
0x1357   :  { %v1584_v9 = vsel %vm135_vm9, %v1578_v8, 0.0 }
0x1358   :  { %1585 = vadd.xlane.f32.xlu1 %v1584_v9 }
0x135a   :  { %v1575_v10 = vpop.f32.mrf.mxu1 }
0x135b   :  { %v1576_v12 = vadd.f32 %v1885_v19, %v1575_v10 }
0x135d   :  { %v1579_v13 = vadd.f32 %v1576_v12, %v1463_v42 }
0x135f   :  { %v1587_v15 = vsel %vm135_vm9, %v1579_v13, 0.0 }
0x1360   :  { %1588 = vadd.xlane.f32.xlu2 %v1587_v15 }
0x13cb   :  { %v1586_v21 = vpop.xlane.xlu1 %1585 }
0x13cc   :  { %v1590_v5 = vmul.f32 %v1586_v21, %v2171_v45 }
0x13ce   :  { %v1592_v24 = vsub.f32 %v1578_v8, %v1590_v5 }
0x13d0   :  { %v1594_v22 = vmul.f32 %v1592_v24, %v1592_v24 }
0x13d2   :  { %v1596_v55 = vsel %vm135_vm9, %v1594_v22, 0.0 }
0x13d3   :  { %v1589_v27 = vpop.xlane.xlu2 %1588  ;;  %1597 = vadd.xlane.f32.xlu2 %v1596_v55 }
0x13d4   :  { %v1591_v30 = vmul.f32 %v1589_v27, %v2171_v45 }
0x13d6   :  { %v1593_v23 = vsub.f32 %v1579_v13, %v1591_v30 }
0x13d8   :  { %v1595_v11 = vmul.f32 %v1593_v23, %v1593_v23 }
0x13da   :  { %v1599_v25 = vsel %vm135_vm9, %v1595_v11, 0.0 }
0x13db   :  { %1600 = vadd.xlane.f32.xlu0 %v1599_v25 }
0x1446   :  { %v1598_v33 = vpop.xlane.xlu2 %1597 }
0x1447   :  { %v1602_v35 = vmul.f32 %v1598_v33, %v2171_v45 }
0x1449   :  { %v1604_v26 = vadd.f32 1e-12, %v1602_v35 }
0x144b   :  { %1980 = vrsqrt.f32 %v1604_v26  ;;  %vm1612_vm3 = vweird.f32 %v1604_v26 }
0x144e   :  { %v1601_v36 = vpop.xlane.xlu0 %1600 }
0x144f   :  { %v1603_v29 = vmul.f32 %v1601_v36, %v2171_v45 }
0x1451   :  { %v1981_v31 = vpop.eup %1980  ;;  %v1605_v37 = vadd.f32 1e-12, %v1603_v29 }
0x1452   :  { %v1607_v28 = vmul.f32 %v1981_v31, %v1604_v26  ;;  %vm1613_vm9 = vweird.f32 %v1981_v31 }
0x1453   :  { %1982 = vrsqrt.f32 %v1605_v37  ;;  %vm1614_vm14 = vmor %vm1612_vm3, %vm1613_vm9  ;;  %vm1622_vm0 = vweird.f32 %v1605_v37 }
0x1454   :  { %v1608_v40 = vmul.f32 %v1981_v31, %v1607_v28 }
0x1456   :  { %v1609_v32 = vmul.f32 0.5, %v1608_v40 }
0x1458   :  { %v1610_v41 = vsub.f32 1.5, %v1609_v32 }
0x1459   :  { %v1983_v3 = vpop.eup %1982 }
0x145a   :  { %v1617_v17 = vmul.f32 %v1983_v3, %v1605_v37  ;;  %v1611_v42 = vmul.f32 %v1981_v31, %v1610_v41  ;;  %vm1623_vm15 = vweird.f32 %v1983_v3 }
0x145b   :  { %vm1624_vm5 = vmor %vm1622_vm0, %vm1623_vm15 }
0x145c   :  { %v1618_v43 = vmul.f32 %v1983_v3, %v1617_v17  ;;  %v1615_v45 = vsel %vm1614_vm14, %v1981_v31, %v1611_v42 }
0x145d   :  { %v1626_v46 = vmul.f32 %v1615_v45, %v1592_v24 }
0x145e   :  { %v1619_v44 = vmul.f32 0.5, %v1618_v43 }
0x145f   :  { %v1631_v52 = vmul.f32 %v1886_v47, %v1626_v46 }
0x1460   :  { %v1620_v18 = vsub.f32 1.5, %v1619_v44 }
0x1461   :  { %v1636_v56 = vadd.f32 %v1887_v54, %v1631_v52 }
0x1462   :  { %v1621_v16 = vmul.f32 %v1983_v3, %v1620_v18 }
0x1464   :  { %v1625_v48 = vsel %vm1624_vm5, %v1983_v3, %v1621_v16 }
0x1465   :  { %v1627_v49 = vmul.f32 %v1625_v48, %v1593_v23 }
0x1467   :  { %v1632_v53 = vmul.f32 %v1886_v47, %v1627_v49 }
0x1469   :  { %v1637_v14 = vadd.f32 %v1887_v54, %v1632_v53 }
0x146b   :  { %v1639_v34 = vrot.slane %v1637_v14, 7 }
0x146d   :  { %v1642_v61 = vsel %vm1641_vm4, %v1636_v56, %v1639_v34 }
0x146e   :  { %v1647_v57 = vmul.f32 %v1888_v51, %v1642_v61 }
0x1470   :  { %v1649_v58 = vsel %vm1648_vm6, %v1647_v57, 0.0 }
0x1471   :  { %1650 = vadd.xlane.f32.xlu1 %v1649_v58 }
0x14e4   :  { %v1651_v60 = vpop.xlane.xlu1 %1650 }
0x14e5   :  { %v1656_v62 = vadd.f32 %v1889_v59, %v1651_v60 }
0x14e7   :  { %1658 = vst.msk [vmem:[%s2689_s20] sm:$0x3] %vm1657_vm7, %v1656_v62 }

</bundles_post_ra>
